<compile_context>
chip_gen: v5e
topology: v5e:2x2
jax: 0.10.0
libtpu: 0.0.40
codegen_flags: <defaults>
</compile_context>

<pallas_src>
import functools

import numpy as np
import jax
import jax.numpy as jnp
from jax import lax
from jax.experimental import pallas as pl
from jax.experimental.pallas import tpu as pltpu

LANE = 128
SUBLANE = 8


def _round_up(x, m):
    return ((x + m - 1) // m) * m


def _pad_to(x, shape):
    pads = [(0, t - s) for s, t in zip(x.shape, shape)]
    if all(p == (0, 0) for p in pads):
        return x
    return jnp.pad(x, pads)


# ---------------------------------------------------------------------------
# The single fused decoder kernel
# ---------------------------------------------------------------------------
def _decoder_kernel(*refs, H0, conv_shapes):
    """refs = (x, w1, b1, w2, b2, w3b, b3b, [wmat_i, brow_i]*n_conv, out).

    Layout conventions (all f32):
      activations : 2D (H*8, W*C)    row = h*8 + b_local, lane = w*C + c
      conv weight : (2, 2, Win*Cin, OW*Cout)  indexed by [row-parity, y-tap]
    """
    n_conv = len(conv_shapes)
    x_ref, w1_ref, b1_ref, w2_ref, b2_ref, w3b_ref, b3b_ref = refs[:7]
    conv_refs = refs[7:7 + 2 * n_conv]
    o_ref = refs[7 + 2 * n_conv]
    f32 = jnp.float32

    # ---- fused MLP: relu(relu(relu(x W1 + b1) W2 + b2) W3 + b3) ----
    h = jnp.dot(x_ref[...], w1_ref[...], preferred_element_type=f32) + b1_ref[...]
    h = jnp.maximum(h, 0.0)
    h = jnp.dot(h, w2_ref[...], preferred_element_type=f32) + b2_ref[...]
    h = jnp.maximum(h, 0.0)
    # third layer emitted per spatial row h -> produces the conv input layout
    rows = []
    for hh in range(H0):
        r = jnp.dot(h, w3b_ref[hh], preferred_element_type=f32) + b3b_ref[hh]
        rows.append(jnp.maximum(r, 0.0))                        # (8, W0*C)
    x2d = jnp.concatenate(rows, axis=0)                         # (H0*8, W0*C)

    # ---- ConvTranspose2d stack (k=4, s=2, p=1): row-parity decomposition ----
    for li, (h_in, win_c, ow_c) in enumerate(conv_shapes):
        w_ref = conv_refs[2 * li]
        b_ref = conv_refs[2 * li + 1]
        b8 = x2d.shape[0] // h_in                               # = 8 (batch block)
        x3 = x2d.reshape(h_in, b8, win_c)
        zrow = jnp.zeros((1, b8, win_c), f32)
        xp = jnp.concatenate([zrow, x3, zrow], axis=0)          # (h_in+2, 8, win_c)
        slab_lo = xp[0:h_in].reshape(h_in * b8, win_c)          # row y-1 (zero top)
        slab_hi = xp[2:h_in + 2].reshape(h_in * b8, win_c)      # row y+1 (zero bot)
        bias = b_ref[...]                                       # (1, ow_c)
        # even output rows oy = 2m   : taps ky = 3 (from y-1) and ky = 1 (from y)
        y_even = (jnp.dot(slab_lo, w_ref[0, 0], preferred_element_type=f32)
                  + jnp.dot(x2d, w_ref[0, 1], preferred_element_type=f32)
                  + bias)
        # odd  output rows oy = 2m+1 : taps ky = 2 (from y)   and ky = 0 (from y+1)
        y_odd = (jnp.dot(x2d, w_ref[1, 0], preferred_element_type=f32)
                 + jnp.dot(slab_hi, w_ref[1, 1], preferred_element_type=f32)
                 + bias)
        if li < n_conv - 1:
            y_even = jnp.maximum(y_even, 0.0)
            y_odd = jnp.maximum(y_odd, 0.0)
        else:
            y_even = jax.nn.sigmoid(y_even)
            y_odd = jax.nn.sigmoid(y_odd)
        # interleave even/odd output rows along leading (row-group) dims only
        y = jnp.concatenate([y_even.reshape(h_in, 1, b8, ow_c),
                             y_odd.reshape(h_in, 1, b8, ow_c)], axis=1)
        x2d = y.reshape(2 * h_in * b8, ow_c)                    # (OH*8, OW*Cout)

    oh = 2 * conv_shapes[-1][0]
    ow_c = conv_shapes[-1][2]
    o_ref[...] = x2d.reshape(oh, x2d.shape[0] // oh, ow_c).astype(o_ref.dtype)


def _whole_array_spec(arr):
    nd = arr.ndim

    def idx(i, _nd=nd):
        return (0,) * _nd

    return pl.BlockSpec(arr.shape, idx)


# ---------------------------------------------------------------------------
# Full module forward (matches CondDecoderConv2D.forward)
# ---------------------------------------------------------------------------
def cond_decoder_conv2d_forward(z, y, kp, cfg):
    B = z.shape[0]
    hidden_channels, H0, W0 = cfg["reshape"]
    n_chan = cfg["img_size"][0]
    conv_shapes = kp["conv_shapes"]
    n_conv = len(conv_shapes)

    B_pad = _round_up(max(B, 1), SUBLANE)
    x = jnp.concatenate([z, y], axis=-1).astype(jnp.float32)     # torch.cat([z,y])
    x = _pad_to(x, (B_pad, kp["w1"].shape[0]))

    oh = 2 * conv_shapes[-1][0]
    ow_c = conv_shapes[-1][2]                                    # = OW * n_chan
    ow = ow_c // n_chan

    operands = [x, kp["w1"], kp["b1"], kp["w2"], kp["b2"], kp["w3b"], kp["b3b"]]
    for wmat, brow in zip(kp["convt_w"], kp["convt_b"]):
        operands += [wmat, brow]

    in_specs = [pl.BlockSpec((SUBLANE, x.shape[1]), lambda i: (i, 0))]
    in_specs += [_whole_array_spec(a) for a in operands[1:]]
    out_spec = pl.BlockSpec((oh, SUBLANE, ow_c), lambda i: (0, i, 0))

    # --- real (unpadded) cost estimate ---
    d_in = cfg["latent_dim"] + cfg["cond_dim"]
    hid = cfg["hidden_dim"]
    feat = hidden_channels * H0 * W0
    K = cfg["kernel_size"]
    flops = 2 * B * (d_in * hid + hid * hid + hid * feat)
    h_sp, c_in = H0, hidden_channels
    for i in range(n_conv):
        c_out = hidden_channels if i < n_conv - 1 else n_chan
        flops += 2 * B * (2 * h_sp) * (2 * h_sp) * (K * K // 4) * c_in * c_out
        h_sp, c_in = 2 * h_sp, c_out
    trans = B * oh * ow * n_chan
    io_bytes = sum(int(np.prod(a.shape)) * 4 for a in operands) + oh * B_pad * ow_c * 4
    vmem_limit = int(min(64 * 1024 * 1024, max(16 * 1024 * 1024, 8 * io_bytes)))

    kernel = functools.partial(_decoder_kernel, H0=H0,
                               conv_shapes=tuple(conv_shapes))
    out3 = pl.pallas_call(
        kernel,
        out_shape=jax.ShapeDtypeStruct((oh, B_pad, ow_c), jnp.float32),
        grid=(B_pad // SUBLANE,),
        in_specs=in_specs,
        out_specs=out_spec,
        compiler_params=pltpu.CompilerParams(
            dimension_semantics=("parallel",),
            vmem_limit_bytes=vmem_limit),
        cost_estimate=pl.CostEstimate(flops=flops, transcendentals=trans,
                                      bytes_accessed=io_bytes),
    )(*operands)

    # (OH, B_pad, OW*n_chan) -> (B, n_chan, OH, OW); tiny wrapper-side relayout
    out = jnp.transpose(out3, (1, 0, 2))[:B]
    out = out.reshape(B, oh, ow, n_chan)
    return jnp.transpose(out, (0, 3, 1, 2))


# ---------------------------------------------------------------------------
# Parameters: deterministic torch-layout init + conversion to kernel layout
# ---------------------------------------------------------------------------
def init_torch_params(key, cfg):
    latent, cond, hid = cfg["latent_dim"], cfg["cond_dim"], cfg["hidden_dim"]
    hidden_channels, H0, W0 = cfg["reshape"]
    n_chan = cfg["img_size"][0]
    K = cfg["kernel_size"]
    feat = hidden_channels * H0 * W0

    def linear(k, fan_in, fan_out):
        kw, kb = jax.random.split(k)
        bound = 1.0 / np.sqrt(fan_in)
        w = jax.random.uniform(kw, (fan_out, fan_in), jnp.float32, -bound, bound)
        b = jax.random.uniform(kb, (fan_out,), jnp.float32, -bound, bound)
        return w, b                                         # torch (out, in)

    keys = jax.random.split(key, 3 + cfg["num_layers"])
    p = {"lin1": linear(keys[0], latent + cond, hid),
         "lin2": linear(keys[1], hid, hid),
         "lin3": linear(keys[2], hid, feat),
         "convt": []}
    for i in range(cfg["num_layers"]):
        cout = hidden_channels if i < cfg["num_layers"] - 1 else n_chan
        kw, kb = jax.random.split(keys[3 + i])
        bound = 1.0 / np.sqrt(hidden_channels * K * K)
        w = jax.random.uniform(kw, (hidden_channels, cout, K, K), jnp.float32,
                               -bound, bound)               # torch (Cin,Cout,K,K)
        b = jax.random.uniform(kb, (cout,), jnp.float32, -bound, bound)
        p["convt"].append((w, b))
    return p


def prep_kernel_params(tp, cfg):
    hidden_channels, H0, W0 = cfg["reshape"]
    n_chan = cfg["img_size"][0]
    K, stride, padding = cfg["kernel_size"], cfg["stride"], cfg["padding"]
    n_conv = cfg["num_layers"]
    assert (K, stride, padding) == (4, 2, 1), (
        "sub-pixel decomposition is specialized to kernel_size=4, stride=2, "
        "padding=1 (the module defaults)")
    # TODO(synk): generalize the parity/tap tables for other (K, stride, padding).

    hid = cfg["hidden_dim"]
    d_in = cfg["latent_dim"] + cfg["cond_dim"]
    d_in_p = _round_up(d_in, LANE)
    hid_p = _round_up(hid, LANE)
    C = hidden_channels
    kp = {}

    def lin_pad(wb, din_p, dout_p):
        w_t, b = wb                                         # torch (out, in), (out,)
        w = np.zeros((din_p, dout_p), np.float32)
        w[:w_t.shape[1], :w_t.shape[0]] = np.asarray(w_t).T
        bb = np.zeros((1, dout_p), np.float32)
        bb[0, :b.shape[0]] = np.asarray(b)
        return jnp.asarray(w), jnp.asarray(bb)

    kp["w1"], kp["b1"] = lin_pad(tp["lin1"], d_in_p, hid_p)
    kp["w2"], kp["b2"] = lin_pad(tp["lin2"], hid_p, hid_p)

    # lin3: split per output spatial row h, columns permuted to (w, c) order so
    # the MLP directly emits the conv-stack activation layout.
    w3_t, b3 = tp["lin3"]                                   # (feat, hid), (feat,)
    feat = C * H0 * W0
    w3 = np.zeros((hid_p, feat), np.float32)
    w3[:hid, :] = np.asarray(w3_t).T
    b3_np = np.asarray(b3)
    HW = H0 * W0
    w3b = np.zeros((H0, hid_p, W0 * C), np.float32)
    b3b = np.zeros((H0, 1, W0 * C), np.float32)
    for h in range(H0):
        for w in range(W0):
            for c in range(C):
                src = c * HW + h * W0 + w                   # torch view(B,C,H,W)
                dst = w * C + c                             # kernel lane order
                w3b[h, :, dst] = w3[:, src]
                b3b[h, 0, dst] = b3_np[src]
    kp["w3b"], kp["b3b"] = jnp.asarray(w3b), jnp.asarray(b3b)

    # ConvTranspose2d layers: fold x-direction conv + boundaries + interleave
    # into dense Wmat[py, dy] of shape (Win*Cin, OW*Cout).
    kp["convt_w"], kp["convt_b"] = [], []
    conv_shapes = []
    h_in, w_in_sp, c_in = H0, W0, C
    for i, (w_t, b) in enumerate(tp["convt"]):
        c_out = hidden_channels if i < n_conv - 1 else n_chan
        w_np = np.asarray(w_t)                              # (Cin, Cout, K, K)
        ow = (w_in_sp - 1) * stride + K - 2 * padding       # = 2 * w_in_sp
        wmat = np.zeros((2, 2, w_in_sp * c_in, ow * c_out), np.float32)
        for py in range(2):
            for dy in range(2):
                ky = (K - 1 - py) - stride * dy
                for wi in range(w_in_sp):
                    for ox in range(ow):
                        kx = ox + padding - stride * wi
                        if 0 <= kx < K:
                            wmat[py, dy,
                                 wi * c_in:(wi + 1) * c_in,
                                 ox * c_out:(ox + 1) * c_out] = w_np[:, :, ky, kx]
        brow = np.tile(np.asarray(b), ow).reshape(1, ow * c_out).astype(np.float32)
        kp["convt_w"].append(jnp.asarray(wmat))
        kp["convt_b"].append(jnp.asarray(brow))
        conv_shapes.append((h_in, w_in_sp * c_in, ow * c_out))
        h_in, w_in_sp, c_in = 2 * h_in, ow, c_out
    kp["conv_shapes"] = tuple(conv_shapes)
    return kp


# ---------------------------------------------------------------------------
# Pure-JAX reference (mirrors the PyTorch module exactly)
# ---------------------------------------------------------------------------
def reference_forward(z, y, tp, cfg):
    B = z.shape[0]
    hidden_channels, H0, W0 = cfg["reshape"]
    s, p, K = cfg["stride"], cfg["padding"], cfg["kernel_size"]
    hi = lax.Precision.HIGHEST

    def lin(x, wb):
        w, b = wb
        return jnp.dot(x, w.T, precision=hi) + b

    x = jax.nn.relu(lin(jnp.concatenate([z, y], axis=-1), tp["lin1"]))
    x = jax.nn.relu(lin(x, tp["lin2"]))
    x = jax.nn.relu(lin(x, tp["lin3"]))
    x = x.reshape(B, hidden_channels, H0, W0)
    for i, (w, b) in enumerate(tp["convt"]):
        w_conv = jnp.flip(w, axis=(2, 3)).transpose(1, 0, 2, 3)   # (Cout,Cin,K,K)
        x = lax.conv_general_dilated(
            x, w_conv, window_strides=(1, 1),
            padding=[(K - 1 - p, K - 1 - p), (K - 1 - p, K - 1 - p)],
            lhs_dilation=(s, s),
            dimension_numbers=("NCHW", "OIHW", "NCHW"),
            precision=hi) + b.reshape(1, -1, 1, 1)
        x = jax.nn.relu(x) if i < cfg["num_layers"] - 1 else jax.nn.sigmoid(x)
    return x


if __name__ == "__main__":
    cfg = dict(img_size=(1, 32, 32), cond_dim=4, latent_dim=10, kernel_size=4,
               num_layers=3, stride=2, padding=1, hidden_dim=32,
               hidden_channels=8)
    cfg["reshape"] = (cfg["hidden_channels"],
                      cfg["img_size"][1] // 2 ** cfg["num_layers"],
                      cfg["img_size"][2] // 2 ** cfg["num_layers"])

    batch = 2
    key = jax.random.PRNGKey(0)
    kz, ky, kparam = jax.random.split(key, 3)
    z = jax.random.normal(kz, (batch, cfg["latent_dim"]), jnp.float32)
    y = jax.random.normal(ky, (batch, cfg["cond_dim"]), jnp.float32)

    tparams = init_torch_params(kparam, cfg)
    kparams = prep_kernel_params(tparams, cfg)

    out = cond_decoder_conv2d_forward(z, y, kparams, cfg)
    out = jax.block_until_ready(out)

    ref = reference_forward(z, y, tparams, cfg)
    assert out.shape == (batch, *cfg["img_size"]), out.shape
    max_err = float(jnp.max(jnp.abs(out - ref)))
    assert jnp.allclose(out, ref, atol=1e-4, rtol=1e-4), max_err

    print("KERNEL_OK")
</pallas_src>

<mosaic_0001>
module attributes {stable_mosaic.version = 11 : i64} {
  func.func @_decoder_kernel(%arg0: i32, %arg1: memref<8x128xf32, #tpu.memory_space<vmem>>, %arg2: memref<128x128xf32, #tpu.memory_space<vmem>>, %arg3: memref<1x128xf32, #tpu.memory_space<vmem>>, %arg4: memref<128x128xf32, #tpu.memory_space<vmem>>, %arg5: memref<1x128xf32, #tpu.memory_space<vmem>>, %arg6: memref<4x128x32xf32, #tpu.memory_space<vmem>>, %arg7: memref<4x1x32xf32, #tpu.memory_space<vmem>>, %arg8: memref<2x2x32x64xf32, #tpu.memory_space<vmem>>, %arg9: memref<1x64xf32, #tpu.memory_space<vmem>>, %arg10: memref<2x2x64x128xf32, #tpu.memory_space<vmem>>, %arg11: memref<1x128xf32, #tpu.memory_space<vmem>>, %arg12: memref<2x2x128x32xf32, #tpu.memory_space<vmem>>, %arg13: memref<1x32xf32, #tpu.memory_space<vmem>>, %arg14: memref<32x8x32xf32, #tpu.memory_space<vmem>>) attributes {dimension_semantics = [#tpu.dimension_semantics<parallel>], iteration_bounds = array<i64: 1>, scalar_prefetch = 0 : i64, scratch_operands = 0 : i64, tpu.core_type = #tpu.core_type<tc>, window_params = [{transform_indices = @transform_0, window_bounds = array<i64: 8, 128>}, {pipeline_mode = #tpu.pipeline_mode<synchronous>, transform_indices = @transform_1, window_bounds = array<i64: 128, 128>}, {pipeline_mode = #tpu.pipeline_mode<synchronous>, transform_indices = @transform_2, window_bounds = array<i64: 1, 128>}, {pipeline_mode = #tpu.pipeline_mode<synchronous>, transform_indices = @transform_3, window_bounds = array<i64: 128, 128>}, {pipeline_mode = #tpu.pipeline_mode<synchronous>, transform_indices = @transform_4, window_bounds = array<i64: 1, 128>}, {pipeline_mode = #tpu.pipeline_mode<synchronous>, transform_indices = @transform_5, window_bounds = array<i64: 4, 128, 32>}, {pipeline_mode = #tpu.pipeline_mode<synchronous>, transform_indices = @transform_6, window_bounds = array<i64: 4, 1, 32>}, {pipeline_mode = #tpu.pipeline_mode<synchronous>, transform_indices = @transform_7, window_bounds = array<i64: 2, 2, 32, 64>}, {pipeline_mode = #tpu.pipeline_mode<synchronous>, transform_indices = @transform_8, window_bounds = array<i64: 1, 64>}, {pipeline_mode = #tpu.pipeline_mode<synchronous>, transform_indices = @transform_9, window_bounds = array<i64: 2, 2, 64, 128>}, {pipeline_mode = #tpu.pipeline_mode<synchronous>, transform_indices = @transform_10, window_bounds = array<i64: 1, 128>}, {pipeline_mode = #tpu.pipeline_mode<synchronous>, transform_indices = @transform_11, window_bounds = array<i64: 2, 2, 128, 32>}, {pipeline_mode = #tpu.pipeline_mode<synchronous>, transform_indices = @transform_12, window_bounds = array<i64: 1, 32>}, {transform_indices = @transform_13, window_bounds = array<i64: 32, 8, 32>}]} {
    %c0 = arith.constant 0 : index
    %c0_0 = arith.constant 0 : index
    %0 = vector.load %arg1[%c0, %c0_0] : memref<8x128xf32, #tpu.memory_space<vmem>>, vector<8x128xf32>
    %c0_1 = arith.constant 0 : index
    %c0_2 = arith.constant 0 : index
    %1 = vector.load %arg2[%c0_1, %c0_2] : memref<128x128xf32, #tpu.memory_space<vmem>>, vector<128x128xf32>
    %cst = arith.constant dense<0.000000e+00> : vector<8x128xf32>
    %2 = tpu.matmul %0, %1, %cst {dimension_numbers = #tpu.dot_dimension_numbers<[1], [0], [0], [1], [0, 0, 1, 1], [], []>} : vector<8x128xf32>, vector<128x128xf32>, vector<8x128xf32> -> vector<8x128xf32>
    %c0_3 = arith.constant 0 : index
    %c0_4 = arith.constant 0 : index
    %3 = vector.load %arg3[%c0_3, %c0_4] : memref<1x128xf32, #tpu.memory_space<vmem>>, vector<1x128xf32>
    %4 = vector.broadcast %3 : vector<1x128xf32> to vector<8x128xf32>
    %5 = arith.addf %2, %4 : vector<8x128xf32>
    %cst_5 = arith.constant 0.000000e+00 : f32
    %6 = vector.broadcast %cst_5 : f32 to vector<8x128xf32>
    %7 = arith.maximumf %5, %6 : vector<8x128xf32>
    %c0_6 = arith.constant 0 : index
    %c0_7 = arith.constant 0 : index
    %8 = vector.load %arg4[%c0_6, %c0_7] : memref<128x128xf32, #tpu.memory_space<vmem>>, vector<128x128xf32>
    %cst_8 = arith.constant dense<0.000000e+00> : vector<8x128xf32>
    %9 = tpu.matmul %7, %8, %cst_8 {dimension_numbers = #tpu.dot_dimension_numbers<[1], [0], [0], [1], [0, 0, 1, 1], [], []>} : vector<8x128xf32>, vector<128x128xf32>, vector<8x128xf32> -> vector<8x128xf32>
    %c0_9 = arith.constant 0 : index
    %c0_10 = arith.constant 0 : index
    %10 = vector.load %arg5[%c0_9, %c0_10] : memref<1x128xf32, #tpu.memory_space<vmem>>, vector<1x128xf32>
    %11 = vector.broadcast %10 : vector<1x128xf32> to vector<8x128xf32>
    %12 = arith.addf %9, %11 : vector<8x128xf32>
    %cst_11 = arith.constant 0.000000e+00 : f32
    %13 = vector.broadcast %cst_11 : f32 to vector<8x128xf32>
    %14 = arith.maximumf %12, %13 : vector<8x128xf32>
    %c0_12 = arith.constant 0 : index
    %c0_13 = arith.constant 0 : index
    %c0_14 = arith.constant 0 : index
    %15 = vector.load %arg6[%c0_12, %c0_13, %c0_14] : memref<4x128x32xf32, #tpu.memory_space<vmem>>, vector<1x128x32xf32>
    %16 = vector.shape_cast %15 : vector<1x128x32xf32> to vector<128x32xf32>
    %cst_15 = arith.constant dense<0.000000e+00> : vector<8x32xf32>
    %17 = tpu.matmul %14, %16, %cst_15 {dimension_numbers = #tpu.dot_dimension_numbers<[1], [0], [0], [1], [0, 0, 1, 1], [], []>} : vector<8x128xf32>, vector<128x32xf32>, vector<8x32xf32> -> vector<8x32xf32>
    %c0_16 = arith.constant 0 : index
    %c0_17 = arith.constant 0 : index
    %c0_18 = arith.constant 0 : index
    %18 = vector.load %arg7[%c0_16, %c0_17, %c0_18] : memref<4x1x32xf32, #tpu.memory_space<vmem>>, vector<1x1x32xf32>
    %19 = vector.shape_cast %18 : vector<1x1x32xf32> to vector<1x32xf32>
    %20 = vector.broadcast %19 : vector<1x32xf32> to vector<8x32xf32>
    %21 = arith.addf %17, %20 : vector<8x32xf32>
    %cst_19 = arith.constant 0.000000e+00 : f32
    %22 = vector.broadcast %cst_19 : f32 to vector<8x32xf32>
    %23 = arith.maximumf %21, %22 : vector<8x32xf32>
    %c1 = arith.constant 1 : index
    %c0_20 = arith.constant 0 : index
    %c0_21 = arith.constant 0 : index
    %24 = vector.load %arg6[%c1, %c0_20, %c0_21] : memref<4x128x32xf32, #tpu.memory_space<vmem>>, vector<1x128x32xf32>
    %25 = vector.shape_cast %24 : vector<1x128x32xf32> to vector<128x32xf32>
    %cst_22 = arith.constant dense<0.000000e+00> : vector<8x32xf32>
    %26 = tpu.matmul %14, %25, %cst_22 {dimension_numbers = #tpu.dot_dimension_numbers<[1], [0], [0], [1], [0, 0, 1, 1], [], []>} : vector<8x128xf32>, vector<128x32xf32>, vector<8x32xf32> -> vector<8x32xf32>
    %c1_23 = arith.constant 1 : index
    %c0_24 = arith.constant 0 : index
    %c0_25 = arith.constant 0 : index
    %27 = vector.load %arg7[%c1_23, %c0_24, %c0_25] : memref<4x1x32xf32, #tpu.memory_space<vmem>>, vector<1x1x32xf32>
    %28 = vector.shape_cast %27 : vector<1x1x32xf32> to vector<1x32xf32>
    %29 = vector.broadcast %28 : vector<1x32xf32> to vector<8x32xf32>
    %30 = arith.addf %26, %29 : vector<8x32xf32>
    %cst_26 = arith.constant 0.000000e+00 : f32
    %31 = vector.broadcast %cst_26 : f32 to vector<8x32xf32>
    %32 = arith.maximumf %30, %31 : vector<8x32xf32>
    %c2 = arith.constant 2 : index
    %c0_27 = arith.constant 0 : index
    %c0_28 = arith.constant 0 : index
    %33 = vector.load %arg6[%c2, %c0_27, %c0_28] : memref<4x128x32xf32, #tpu.memory_space<vmem>>, vector<1x128x32xf32>
    %34 = vector.shape_cast %33 : vector<1x128x32xf32> to vector<128x32xf32>
    %cst_29 = arith.constant dense<0.000000e+00> : vector<8x32xf32>
    %35 = tpu.matmul %14, %34, %cst_29 {dimension_numbers = #tpu.dot_dimension_numbers<[1], [0], [0], [1], [0, 0, 1, 1], [], []>} : vector<8x128xf32>, vector<128x32xf32>, vector<8x32xf32> -> vector<8x32xf32>
    %c2_30 = arith.constant 2 : index
    %c0_31 = arith.constant 0 : index
    %c0_32 = arith.constant 0 : index
    %36 = vector.load %arg7[%c2_30, %c0_31, %c0_32] : memref<4x1x32xf32, #tpu.memory_space<vmem>>, vector<1x1x32xf32>
    %37 = vector.shape_cast %36 : vector<1x1x32xf32> to vector<1x32xf32>
    %38 = vector.broadcast %37 : vector<1x32xf32> to vector<8x32xf32>
    %39 = arith.addf %35, %38 : vector<8x32xf32>
    %cst_33 = arith.constant 0.000000e+00 : f32
    %40 = vector.broadcast %cst_33 : f32 to vector<8x32xf32>
    %41 = arith.maximumf %39, %40 : vector<8x32xf32>
    %c3 = arith.constant 3 : index
    %c0_34 = arith.constant 0 : index
    %c0_35 = arith.constant 0 : index
    %42 = vector.load %arg6[%c3, %c0_34, %c0_35] : memref<4x128x32xf32, #tpu.memory_space<vmem>>, vector<1x128x32xf32>
    %43 = vector.shape_cast %42 : vector<1x128x32xf32> to vector<128x32xf32>
    %cst_36 = arith.constant dense<0.000000e+00> : vector<8x32xf32>
    %44 = tpu.matmul %14, %43, %cst_36 {dimension_numbers = #tpu.dot_dimension_numbers<[1], [0], [0], [1], [0, 0, 1, 1], [], []>} : vector<8x128xf32>, vector<128x32xf32>, vector<8x32xf32> -> vector<8x32xf32>
    %c3_37 = arith.constant 3 : index
    %c0_38 = arith.constant 0 : index
    %c0_39 = arith.constant 0 : index
    %45 = vector.load %arg7[%c3_37, %c0_38, %c0_39] : memref<4x1x32xf32, #tpu.memory_space<vmem>>, vector<1x1x32xf32>
    %46 = vector.shape_cast %45 : vector<1x1x32xf32> to vector<1x32xf32>
    %47 = vector.broadcast %46 : vector<1x32xf32> to vector<8x32xf32>
    %48 = arith.addf %44, %47 : vector<8x32xf32>
    %cst_40 = arith.constant 0.000000e+00 : f32
    %49 = vector.broadcast %cst_40 : f32 to vector<8x32xf32>
    %50 = arith.maximumf %48, %49 : vector<8x32xf32>
    %51 = tpu.concatenate %23, %32, %41, %50 in 0 : vector<8x32xf32>, vector<8x32xf32>, vector<8x32xf32>, vector<8x32xf32> -> vector<32x32xf32>
    %52 = vector.shape_cast %51 : vector<32x32xf32> to vector<4x8x32xf32>
    %cst_41 = arith.constant 0.000000e+00 : f32
    %53 = vector.broadcast %cst_41 : f32 to vector<1x8x32xf32>
    %54 = tpu.concatenate %53, %52, %53 in 0 : vector<1x8x32xf32>, vector<4x8x32xf32>, vector<1x8x32xf32> -> vector<6x8x32xf32>
    %55 = vector.extract_strided_slice %54 {offsets = [0, 0, 0], sizes = [4, 8, 32], strides = [1, 1, 1]} : vector<6x8x32xf32> to vector<4x8x32xf32>
    %56 = vector.shape_cast %55 : vector<4x8x32xf32> to vector<32x32xf32>
    %57 = vector.extract_strided_slice %54 {offsets = [2, 0, 0], sizes = [4, 8, 32], strides = [1, 1, 1]} : vector<6x8x32xf32> to vector<4x8x32xf32>
    %58 = vector.shape_cast %57 : vector<4x8x32xf32> to vector<32x32xf32>
    %c0_42 = arith.constant 0 : index
    %c0_43 = arith.constant 0 : index
    %59 = vector.load %arg9[%c0_42, %c0_43] : memref<1x64xf32, #tpu.memory_space<vmem>>, vector<1x64xf32>
    %c0_44 = arith.constant 0 : index
    %c0_45 = arith.constant 0 : index
    %c0_46 = arith.constant 0 : index
    %c0_47 = arith.constant 0 : index
    %60 = vector.load %arg8[%c0_44, %c0_45, %c0_46, %c0_47] : memref<2x2x32x64xf32, #tpu.memory_space<vmem>>, vector<1x1x32x64xf32>
    %61 = vector.shape_cast %60 : vector<1x1x32x64xf32> to vector<32x64xf32>
    %cst_48 = arith.constant dense<0.000000e+00> : vector<32x64xf32>
    %62 = tpu.matmul %56, %61, %cst_48 {dimension_numbers = #tpu.dot_dimension_numbers<[1], [0], [0], [1], [0, 0, 1, 1], [], []>} : vector<32x32xf32>, vector<32x64xf32>, vector<32x64xf32> -> vector<32x64xf32>
    %c0_49 = arith.constant 0 : index
    %c1_50 = arith.constant 1 : index
    %c0_51 = arith.constant 0 : index
    %c0_52 = arith.constant 0 : index
    %63 = vector.load %arg8[%c0_49, %c1_50, %c0_51, %c0_52] : memref<2x2x32x64xf32, #tpu.memory_space<vmem>>, vector<1x1x32x64xf32>
    %64 = vector.shape_cast %63 : vector<1x1x32x64xf32> to vector<32x64xf32>
    %cst_53 = arith.constant dense<0.000000e+00> : vector<32x64xf32>
    %65 = tpu.matmul %51, %64, %cst_53 {dimension_numbers = #tpu.dot_dimension_numbers<[1], [0], [0], [1], [0, 0, 1, 1], [], []>} : vector<32x32xf32>, vector<32x64xf32>, vector<32x64xf32> -> vector<32x64xf32>
    %66 = arith.addf %62, %65 : vector<32x64xf32>
    %67 = vector.broadcast %59 : vector<1x64xf32> to vector<32x64xf32>
    %68 = arith.addf %66, %67 : vector<32x64xf32>
    %c1_54 = arith.constant 1 : index
    %c0_55 = arith.constant 0 : index
    %c0_56 = arith.constant 0 : index
    %c0_57 = arith.constant 0 : index
    %69 = vector.load %arg8[%c1_54, %c0_55, %c0_56, %c0_57] : memref<2x2x32x64xf32, #tpu.memory_space<vmem>>, vector<1x1x32x64xf32>
    %70 = vector.shape_cast %69 : vector<1x1x32x64xf32> to vector<32x64xf32>
    %cst_58 = arith.constant dense<0.000000e+00> : vector<32x64xf32>
    %71 = tpu.matmul %51, %70, %cst_58 {dimension_numbers = #tpu.dot_dimension_numbers<[1], [0], [0], [1], [0, 0, 1, 1], [], []>} : vector<32x32xf32>, vector<32x64xf32>, vector<32x64xf32> -> vector<32x64xf32>
    %c1_59 = arith.constant 1 : index
    %c1_60 = arith.constant 1 : index
    %c0_61 = arith.constant 0 : index
    %c0_62 = arith.constant 0 : index
    %72 = vector.load %arg8[%c1_59, %c1_60, %c0_61, %c0_62] : memref<2x2x32x64xf32, #tpu.memory_space<vmem>>, vector<1x1x32x64xf32>
    %73 = vector.shape_cast %72 : vector<1x1x32x64xf32> to vector<32x64xf32>
    %cst_63 = arith.constant dense<0.000000e+00> : vector<32x64xf32>
    %74 = tpu.matmul %58, %73, %cst_63 {dimension_numbers = #tpu.dot_dimension_numbers<[1], [0], [0], [1], [0, 0, 1, 1], [], []>} : vector<32x32xf32>, vector<32x64xf32>, vector<32x64xf32> -> vector<32x64xf32>
    %75 = arith.addf %71, %74 : vector<32x64xf32>
    %76 = vector.broadcast %59 : vector<1x64xf32> to vector<32x64xf32>
    %77 = arith.addf %75, %76 : vector<32x64xf32>
    %cst_64 = arith.constant 0.000000e+00 : f32
    %78 = vector.broadcast %cst_64 : f32 to vector<32x64xf32>
    %79 = arith.maximumf %68, %78 : vector<32x64xf32>
    %cst_65 = arith.constant 0.000000e+00 : f32
    %80 = vector.broadcast %cst_65 : f32 to vector<32x64xf32>
    %81 = arith.maximumf %77, %80 : vector<32x64xf32>
    %82 = vector.shape_cast %79 : vector<32x64xf32> to vector<4x1x8x64xf32>
    %83 = vector.shape_cast %81 : vector<32x64xf32> to vector<4x1x8x64xf32>
    %84 = tpu.concatenate %82, %83 in 1 : vector<4x1x8x64xf32>, vector<4x1x8x64xf32> -> vector<4x2x8x64xf32>
    %85 = vector.shape_cast %84 : vector<4x2x8x64xf32> to vector<64x64xf32>
    %86 = vector.shape_cast %85 : vector<64x64xf32> to vector<8x8x64xf32>
    %cst_66 = arith.constant 0.000000e+00 : f32
    %87 = vector.broadcast %cst_66 : f32 to vector<1x8x64xf32>
    %88 = tpu.concatenate %87, %86, %87 in 0 : vector<1x8x64xf32>, vector<8x8x64xf32>, vector<1x8x64xf32> -> vector<10x8x64xf32>
    %89 = vector.extract_strided_slice %88 {offsets = [0, 0, 0], sizes = [8, 8, 64], strides = [1, 1, 1]} : vector<10x8x64xf32> to vector<8x8x64xf32>
    %90 = vector.shape_cast %89 : vector<8x8x64xf32> to vector<64x64xf32>
    %91 = vector.extract_strided_slice %88 {offsets = [2, 0, 0], sizes = [8, 8, 64], strides = [1, 1, 1]} : vector<10x8x64xf32> to vector<8x8x64xf32>
    %92 = vector.shape_cast %91 : vector<8x8x64xf32> to vector<64x64xf32>
    %c0_67 = arith.constant 0 : index
    %c0_68 = arith.constant 0 : index
    %93 = vector.load %arg11[%c0_67, %c0_68] : memref<1x128xf32, #tpu.memory_space<vmem>>, vector<1x128xf32>
    %c0_69 = arith.constant 0 : index
    %c0_70 = arith.constant 0 : index
    %c0_71 = arith.constant 0 : index
    %c0_72 = arith.constant 0 : index
    %94 = vector.load %arg10[%c0_69, %c0_70, %c0_71, %c0_72] : memref<2x2x64x128xf32, #tpu.memory_space<vmem>>, vector<1x1x64x128xf32>
    %95 = vector.shape_cast %94 : vector<1x1x64x128xf32> to vector<64x128xf32>
    %cst_73 = arith.constant dense<0.000000e+00> : vector<64x128xf32>
    %96 = tpu.matmul %90, %95, %cst_73 {dimension_numbers = #tpu.dot_dimension_numbers<[1], [0], [0], [1], [0, 0, 1, 1], [], []>} : vector<64x64xf32>, vector<64x128xf32>, vector<64x128xf32> -> vector<64x128xf32>
    %c0_74 = arith.constant 0 : index
    %c1_75 = arith.constant 1 : index
    %c0_76 = arith.constant 0 : index
    %c0_77 = arith.constant 0 : index
    %97 = vector.load %arg10[%c0_74, %c1_75, %c0_76, %c0_77] : memref<2x2x64x128xf32, #tpu.memory_space<vmem>>, vector<1x1x64x128xf32>
    %98 = vector.shape_cast %97 : vector<1x1x64x128xf32> to vector<64x128xf32>
    %cst_78 = arith.constant dense<0.000000e+00> : vector<64x128xf32>
    %99 = tpu.matmul %85, %98, %cst_78 {dimension_numbers = #tpu.dot_dimension_numbers<[1], [0], [0], [1], [0, 0, 1, 1], [], []>} : vector<64x64xf32>, vector<64x128xf32>, vector<64x128xf32> -> vector<64x128xf32>
    %100 = arith.addf %96, %99 : vector<64x128xf32>
    %101 = vector.broadcast %93 : vector<1x128xf32> to vector<64x128xf32>
    %102 = arith.addf %100, %101 : vector<64x128xf32>
    %c1_79 = arith.constant 1 : index
    %c0_80 = arith.constant 0 : index
    %c0_81 = arith.constant 0 : index
    %c0_82 = arith.constant 0 : index
    %103 = vector.load %arg10[%c1_79, %c0_80, %c0_81, %c0_82] : memref<2x2x64x128xf32, #tpu.memory_space<vmem>>, vector<1x1x64x128xf32>
    %104 = vector.shape_cast %103 : vector<1x1x64x128xf32> to vector<64x128xf32>
    %cst_83 = arith.constant dense<0.000000e+00> : vector<64x128xf32>
    %105 = tpu.matmul %85, %104, %cst_83 {dimension_numbers = #tpu.dot_dimension_numbers<[1], [0], [0], [1], [0, 0, 1, 1], [], []>} : vector<64x64xf32>, vector<64x128xf32>, vector<64x128xf32> -> vector<64x128xf32>
    %c1_84 = arith.constant 1 : index
    %c1_85 = arith.constant 1 : index
    %c0_86 = arith.constant 0 : index
    %c0_87 = arith.constant 0 : index
    %106 = vector.load %arg10[%c1_84, %c1_85, %c0_86, %c0_87] : memref<2x2x64x128xf32, #tpu.memory_space<vmem>>, vector<1x1x64x128xf32>
    %107 = vector.shape_cast %106 : vector<1x1x64x128xf32> to vector<64x128xf32>
    %cst_88 = arith.constant dense<0.000000e+00> : vector<64x128xf32>
    %108 = tpu.matmul %92, %107, %cst_88 {dimension_numbers = #tpu.dot_dimension_numbers<[1], [0], [0], [1], [0, 0, 1, 1], [], []>} : vector<64x64xf32>, vector<64x128xf32>, vector<64x128xf32> -> vector<64x128xf32>
    %109 = arith.addf %105, %108 : vector<64x128xf32>
    %110 = vector.broadcast %93 : vector<1x128xf32> to vector<64x128xf32>
    %111 = arith.addf %109, %110 : vector<64x128xf32>
    %cst_89 = arith.constant 0.000000e+00 : f32
    %112 = vector.broadcast %cst_89 : f32 to vector<64x128xf32>
    %113 = arith.maximumf %102, %112 : vector<64x128xf32>
    %cst_90 = arith.constant 0.000000e+00 : f32
    %114 = vector.broadcast %cst_90 : f32 to vector<64x128xf32>
    %115 = arith.maximumf %111, %114 : vector<64x128xf32>
    %116 = vector.shape_cast %113 : vector<64x128xf32> to vector<8x1x8x128xf32>
    %117 = vector.shape_cast %115 : vector<64x128xf32> to vector<8x1x8x128xf32>
    %118 = tpu.concatenate %116, %117 in 1 : vector<8x1x8x128xf32>, vector<8x1x8x128xf32> -> vector<8x2x8x128xf32>
    %119 = vector.shape_cast %118 : vector<8x2x8x128xf32> to vector<128x128xf32>
    %120 = vector.shape_cast %119 : vector<128x128xf32> to vector<16x8x128xf32>
    %cst_91 = arith.constant 0.000000e+00 : f32
    %121 = vector.broadcast %cst_91 : f32 to vector<1x8x128xf32>
    %122 = tpu.concatenate %121, %120, %121 in 0 : vector<1x8x128xf32>, vector<16x8x128xf32>, vector<1x8x128xf32> -> vector<18x8x128xf32>
    %123 = vector.extract_strided_slice %122 {offsets = [0, 0, 0], sizes = [16, 8, 128], strides = [1, 1, 1]} : vector<18x8x128xf32> to vector<16x8x128xf32>
    %124 = vector.shape_cast %123 : vector<16x8x128xf32> to vector<128x128xf32>
    %125 = vector.extract_strided_slice %122 {offsets = [2, 0, 0], sizes = [16, 8, 128], strides = [1, 1, 1]} : vector<18x8x128xf32> to vector<16x8x128xf32>
    %126 = vector.shape_cast %125 : vector<16x8x128xf32> to vector<128x128xf32>
    %c0_92 = arith.constant 0 : index
    %c0_93 = arith.constant 0 : index
    %127 = vector.load %arg13[%c0_92, %c0_93] : memref<1x32xf32, #tpu.memory_space<vmem>>, vector<1x32xf32>
    %c0_94 = arith.constant 0 : index
    %c0_95 = arith.constant 0 : index
    %c0_96 = arith.constant 0 : index
    %c0_97 = arith.constant 0 : index
    %128 = vector.load %arg12[%c0_94, %c0_95, %c0_96, %c0_97] : memref<2x2x128x32xf32, #tpu.memory_space<vmem>>, vector<1x1x128x32xf32>
    %129 = vector.shape_cast %128 : vector<1x1x128x32xf32> to vector<128x32xf32>
    %cst_98 = arith.constant dense<0.000000e+00> : vector<128x32xf32>
    %130 = tpu.matmul %124, %129, %cst_98 {dimension_numbers = #tpu.dot_dimension_numbers<[1], [0], [0], [1], [0, 0, 1, 1], [], []>} : vector<128x128xf32>, vector<128x32xf32>, vector<128x32xf32> -> vector<128x32xf32>
    %c0_99 = arith.constant 0 : index
    %c1_100 = arith.constant 1 : index
    %c0_101 = arith.constant 0 : index
    %c0_102 = arith.constant 0 : index
    %131 = vector.load %arg12[%c0_99, %c1_100, %c0_101, %c0_102] : memref<2x2x128x32xf32, #tpu.memory_space<vmem>>, vector<1x1x128x32xf32>
    %132 = vector.shape_cast %131 : vector<1x1x128x32xf32> to vector<128x32xf32>
    %cst_103 = arith.constant dense<0.000000e+00> : vector<128x32xf32>
    %133 = tpu.matmul %119, %132, %cst_103 {dimension_numbers = #tpu.dot_dimension_numbers<[1], [0], [0], [1], [0, 0, 1, 1], [], []>} : vector<128x128xf32>, vector<128x32xf32>, vector<128x32xf32> -> vector<128x32xf32>
    %134 = arith.addf %130, %133 : vector<128x32xf32>
    %135 = vector.broadcast %127 : vector<1x32xf32> to vector<128x32xf32>
    %136 = arith.addf %134, %135 : vector<128x32xf32>
    %c1_104 = arith.constant 1 : index
    %c0_105 = arith.constant 0 : index
    %c0_106 = arith.constant 0 : index
    %c0_107 = arith.constant 0 : index
    %137 = vector.load %arg12[%c1_104, %c0_105, %c0_106, %c0_107] : memref<2x2x128x32xf32, #tpu.memory_space<vmem>>, vector<1x1x128x32xf32>
    %138 = vector.shape_cast %137 : vector<1x1x128x32xf32> to vector<128x32xf32>
    %cst_108 = arith.constant dense<0.000000e+00> : vector<128x32xf32>
    %139 = tpu.matmul %119, %138, %cst_108 {dimension_numbers = #tpu.dot_dimension_numbers<[1], [0], [0], [1], [0, 0, 1, 1], [], []>} : vector<128x128xf32>, vector<128x32xf32>, vector<128x32xf32> -> vector<128x32xf32>
    %c1_109 = arith.constant 1 : index
    %c1_110 = arith.constant 1 : index
    %c0_111 = arith.constant 0 : index
    %c0_112 = arith.constant 0 : index
    %140 = vector.load %arg12[%c1_109, %c1_110, %c0_111, %c0_112] : memref<2x2x128x32xf32, #tpu.memory_space<vmem>>, vector<1x1x128x32xf32>
    %141 = vector.shape_cast %140 : vector<1x1x128x32xf32> to vector<128x32xf32>
    %cst_113 = arith.constant dense<0.000000e+00> : vector<128x32xf32>
    %142 = tpu.matmul %126, %141, %cst_113 {dimension_numbers = #tpu.dot_dimension_numbers<[1], [0], [0], [1], [0, 0, 1, 1], [], []>} : vector<128x128xf32>, vector<128x32xf32>, vector<128x32xf32> -> vector<128x32xf32>
    %143 = arith.addf %139, %142 : vector<128x32xf32>
    %144 = vector.broadcast %127 : vector<1x32xf32> to vector<128x32xf32>
    %145 = arith.addf %143, %144 : vector<128x32xf32>
    %146 = arith.negf %136 : vector<128x32xf32>
    %147 = math.exp %146 : vector<128x32xf32>
    %cst_114 = arith.constant 1.000000e+00 : f32
    %148 = vector.broadcast %cst_114 : f32 to vector<128x32xf32>
    %149 = arith.addf %148, %147 : vector<128x32xf32>
    %150 = arith.divf %148, %149 : vector<128x32xf32>
    %151 = arith.negf %145 : vector<128x32xf32>
    %152 = math.exp %151 : vector<128x32xf32>
    %cst_115 = arith.constant 1.000000e+00 : f32
    %153 = vector.broadcast %cst_115 : f32 to vector<128x32xf32>
    %154 = arith.addf %153, %152 : vector<128x32xf32>
    %155 = arith.divf %153, %154 : vector<128x32xf32>
    %156 = vector.shape_cast %150 : vector<128x32xf32> to vector<16x1x8x32xf32>
    %157 = vector.shape_cast %155 : vector<128x32xf32> to vector<16x1x8x32xf32>
    %158 = tpu.concatenate %156, %157 in 1 : vector<16x1x8x32xf32>, vector<16x1x8x32xf32> -> vector<16x2x8x32xf32>
    %159 = vector.shape_cast %158 : vector<16x2x8x32xf32> to vector<256x32xf32>
    %160 = vector.shape_cast %159 : vector<256x32xf32> to vector<32x8x32xf32>
    %c0_116 = arith.constant 0 : index
    %c0_117 = arith.constant 0 : index
    %c0_118 = arith.constant 0 : index
    %161 = vector.load %arg14[%c0_116, %c0_117, %c0_118] : memref<32x8x32xf32, #tpu.memory_space<vmem>>, vector<32x8x32xf32>
    tpu.vector_store %arg14[%c0_116, %c0_117, %c0_118], %160 {strides = array<i32>} : memref<32x8x32xf32, #tpu.memory_space<vmem>>, vector<32x8x32xf32>,
    return
  }
  func.func @transform_0(%arg0: i32) -> (i32, i32) {
    %c0_i32 = arith.constant 0 : i32
    %c0_i32_0 = arith.constant 0 : i32
    return %arg0, %c0_i32 : i32, i32
  }
  func.func @transform_1(%arg0: i32) -> (i32, i32) {
    %c0_i32 = arith.constant 0 : i32
    %c0_i32_0 = arith.constant 0 : i32
    %c0_i32_1 = arith.constant 0 : i32
    return %c0_i32, %c0_i32_0 : i32, i32
  }
  func.func @transform_2(%arg0: i32) -> (i32, i32) {
    %c0_i32 = arith.constant 0 : i32
    %c0_i32_0 = arith.constant 0 : i32
    %c0_i32_1 = arith.constant 0 : i32
    return %c0_i32, %c0_i32_0 : i32, i32
  }
  func.func @transform_3(%arg0: i32) -> (i32, i32) {
    %c0_i32 = arith.constant 0 : i32
    %c0_i32_0 = arith.constant 0 : i32
    %c0_i32_1 = arith.constant 0 : i32
    return %c0_i32, %c0_i32_0 : i32, i32
  }
  func.func @transform_4(%arg0: i32) -> (i32, i32) {
    %c0_i32 = arith.constant 0 : i32
    %c0_i32_0 = arith.constant 0 : i32
    %c0_i32_1 = arith.constant 0 : i32
    return %c0_i32, %c0_i32_0 : i32, i32
  }
  func.func @transform_5(%arg0: i32) -> (i32, i32, i32) {
    %c0_i32 = arith.constant 0 : i32
    %c0_i32_0 = arith.constant 0 : i32
    %c0_i32_1 = arith.constant 0 : i32
    %c0_i32_2 = arith.constant 0 : i32
    return %c0_i32, %c0_i32_0, %c0_i32_1 : i32, i32, i32
  }
  func.func @transform_6(%arg0: i32) -> (i32, i32, i32) {
    %c0_i32 = arith.constant 0 : i32
    %c0_i32_0 = arith.constant 0 : i32
    %c0_i32_1 = arith.constant 0 : i32
    %c0_i32_2 = arith.constant 0 : i32
    return %c0_i32, %c0_i32_0, %c0_i32_1 : i32, i32, i32
  }
  func.func @transform_7(%arg0: i32) -> (i32, i32, i32, i32) {
    %c0_i32 = arith.constant 0 : i32
    %c0_i32_0 = arith.constant 0 : i32
    %c0_i32_1 = arith.constant 0 : i32
    %c0_i32_2 = arith.constant 0 : i32
    %c0_i32_3 = arith.constant 0 : i32
    return %c0_i32, %c0_i32_0, %c0_i32_1, %c0_i32_2 : i32, i32, i32, i32
  }
  func.func @transform_8(%arg0: i32) -> (i32, i32) {
    %c0_i32 = arith.constant 0 : i32
    %c0_i32_0 = arith.constant 0 : i32
    %c0_i32_1 = arith.constant 0 : i32
    return %c0_i32, %c0_i32_0 : i32, i32
  }
  func.func @transform_9(%arg0: i32) -> (i32, i32, i32, i32) {
    %c0_i32 = arith.constant 0 : i32
    %c0_i32_0 = arith.constant 0 : i32
    %c0_i32_1 = arith.constant 0 : i32
    %c0_i32_2 = arith.constant 0 : i32
    %c0_i32_3 = arith.constant 0 : i32
    return %c0_i32, %c0_i32_0, %c0_i32_1, %c0_i32_2 : i32, i32, i32, i32
  }
  func.func @transform_10(%arg0: i32) -> (i32, i32) {
    %c0_i32 = arith.constant 0 : i32
    %c0_i32_0 = arith.constant 0 : i32
    %c0_i32_1 = arith.constant 0 : i32
    return %c0_i32, %c0_i32_0 : i32, i32
  }
  func.func @transform_11(%arg0: i32) -> (i32, i32, i32, i32) {
    %c0_i32 = arith.constant 0 : i32
    %c0_i32_0 = arith.constant 0 : i32
    %c0_i32_1 = arith.constant 0 : i32
    %c0_i32_2 = arith.constant 0 : i32
    %c0_i32_3 = arith.constant 0 : i32
    return %c0_i32, %c0_i32_0, %c0_i32_1, %c0_i32_2 : i32, i32, i32, i32
  }
  func.func @transform_12(%arg0: i32) -> (i32, i32) {
    %c0_i32 = arith.constant 0 : i32
    %c0_i32_0 = arith.constant 0 : i32
    %c0_i32_1 = arith.constant 0 : i32
    return %c0_i32, %c0_i32_0 : i32, i32
  }
  func.func @transform_13(%arg0: i32) -> (i32, i32, i32) {
    %c0_i32 = arith.constant 0 : i32
    %c0_i32_0 = arith.constant 0 : i32
    %c0_i32_1 = arith.constant 0 : i32
    return %c0_i32, %arg0, %c0_i32_0 : i32, i32, i32
  }
}

</mosaic_0001>

<bundles_post_ra>
// kernel: tpu_custom_call.1
= control target key start
LH: loop header
LB: loop body
LE: loop exit
PB: predicated region body
PF: predicated region fallthrough
CT: control target
= control target key end

     0   :  { %s3436_s0 = inlined_call_operand.vmem [shape: f32[8,128], index: 0, kind: input, shape index: {}]   ;;  %s3437_s1 = inlined_call_operand.vmem [shape: f32[128,128], index: 1, kind: input, shape index: {}]   ;;  %s3438_s2 = inlined_call_operand.vmem [shape: f32[1,128], index: 2, kind: input, shape index: {}]   ;;  %s3439_s3 = inlined_call_operand.vmem [shape: f32[128,128], index: 3, kind: input, shape index: {}]   ;;  %s3440_s4 = inlined_call_operand.vmem [shape: f32[1,128], index: 4, kind: input, shape index: {}]   ;;  %s3441_s5 = inlined_call_operand.vmem [shape: f32[4,128,32], index: 5, kind: input, shape index: {}]   ;;  %s3442_s6 = inlined_call_operand.vmem [shape: f32[4,1,32], index: 6, kind: input, shape index: {}]   ;;  %s3443_s7 = inlined_call_operand.vmem [shape: f32[2,2,32,64], index: 7, kind: input, shape index: {}]   ;;  %s3444_s8 = inlined_call_operand.vmem [shape: f32[1,64], index: 8, kind: input, shape index: {}]   ;;  %s3445_s9 = inlined_call_operand.vmem [shape: f32[2,2,64,128], index: 9, kind: input, shape index: {}]   ;;  %s3446_s10 = inlined_call_operand.vmem [shape: f32[1,128], index: 10, kind: input, shape index: {}]   ;;  %s3447_s11 = inlined_call_operand.vmem [shape: f32[2,2,128,32], index: 11, kind: input, shape index: {}]   ;;  %s3448_s12 = inlined_call_operand.vmem [shape: f32[1,32], index: 12, kind: input, shape index: {}]   ;;  %s3449_s13 = inlined_call_operand.hbm [shape: f32[32,8,32], index: 13, kind: output, shape index: {}]  }
   0x1   :  { %v61_v0 = vld [vmem:[%s3437_s1 + $0x78] sm:$0xff]  ;;  %v60_v1 = vld [vmem:[%s3437_s1 + $0x70] sm:$0xff]  ;;  %v59_v2 = vld [vmem:[%s3437_s1 + $0x68] sm:$0xff] }
   0x2   :  { %66 = vmatpush.msra.mxu0 %v61_v0  ;;  %v58_v3 = vld [vmem:[%s3437_s1 + $0x60] sm:$0xff]  ;;  %v102_v4 = vld [vmem:[%s3439_s3 + $0x78] sm:$0xff]  ;;  %v101_v6 = vld [vmem:[%s3439_s3 + $0x70] sm:$0xff] }
   0x3   :  { %v57_v5 = vld [vmem:[%s3437_s1 + $0x58] sm:$0xff]  ;;  %107 = vmatpush.msra.mxu1 %v102_v4  ;;  %v100_v7 = vld [vmem:[%s3439_s3 + $0x68] sm:$0xff]  ;;  %v56_v8 = vld [vmem:[%s3437_s1 + $0x50] sm:$0xff] }
   0x4   :  { %67 = vmatpush.msra.mxu0 %v60_v1  ;;  %v55_v9 = vld [vmem:[%s3437_s1 + $0x48] sm:$0xff]  ;;  %v99_v10 = vld [vmem:[%s3439_s3 + $0x60] sm:$0xff]  ;;  %v98_v12 = vld [vmem:[%s3439_s3 + $0x58] sm:$0xff] }
   0x5   :  { %108 = vmatpush.msra.mxu1 %v101_v6  ;;  %v54_v11 = vld [vmem:[%s3437_s1 + $0x40] sm:$0xff]  ;;  %v97_v13 = vld [vmem:[%s3439_s3 + $0x50] sm:$0xff] }
   0x6   :  { %68 = vmatpush.msra.mxu0 %v59_v2 }
   0x7   :  { %109 = vmatpush.msra.mxu1 %v100_v7 }
   0x8   :  { %69 = vmatpush.msra.mxu0 %v58_v3 }
   0x9   :  { %110 = vmatpush.msra.mxu1 %v99_v10 }
   0xa   :  { %70 = vmatpush.msra.mxu0 %v57_v5 }
   0xc   :  { %71 = vmatpush.msra.mxu0 %v56_v8 }
   0xe   :  { %72 = vmatpush.msra.mxu0 %v55_v9 }
   0xf   :  { %18 = vsyncpa [#allocation3], 0  ;;  %v53_v14 = vld [vmem:[%s3437_s1 + $0x38] sm:$0xff]  ;;  %111 = vmatpush.msra.mxu1 %v98_v12  ;;  %v96_v15 = vld [vmem:[%s3439_s3 + $0x48] sm:$0xff]  ;;  %vm308_vm0 = vcmask 261120   ;;  %vm487_vm1 = vcmask 523264  }
  0x10   :  { %73 = vmatpush.msra.mxu0 %v54_v11  ;;  %v52_v16 = vld [vmem:[%s3437_s1 + $0x30] sm:$0xff]  ;;  %v95_v17 = vld [vmem:[%s3439_s3 + $0x40] sm:$0xff]  ;;  %v51_v18 = vld [vmem:[%s3437_s1 + $0x28] sm:$0xff] }
  0x11   :  { %112 = vmatpush.msra.mxu1 %v97_v13  ;;  %v94_v19 = vld [vmem:[%s3439_s3 + $0x38] sm:$0xff]  ;;  %v50_v20 = vld [vmem:[%s3437_s1 + $0x20] sm:$0xff]  ;;  %v93_v21 = vld [vmem:[%s3439_s3 + $0x30] sm:$0xff] }
  0x12   :  { %74 = vmatpush.msra.mxu0 %v53_v14  ;;  %v49_v22 = vld [vmem:[%s3437_s1 + $0x18] sm:$0xff]  ;;  %v92_v23 = vld [vmem:[%s3439_s3 + $0x28] sm:$0xff]  ;;  %v48_v24 = vld [vmem:[%s3437_s1 + $0x10] sm:$0xff] }
  0x13   :  { %113 = vmatpush.msra.mxu1 %v96_v15  ;;  %v91_v25 = vld [vmem:[%s3439_s3 + $0x20] sm:$0xff]  ;;  %v47_v26 = vld [vmem:[%s3437_s1 + $0x8] sm:$0xff]  ;;  %v90_v27 = vld [vmem:[%s3439_s3 + $0x18] sm:$0xff] }
  0x14   :  { %75 = vmatpush.msra.mxu0 %v52_v16  ;;  %v46_v28 = vld [vmem:[%s3437_s1] sm:$0xff]  ;;  %v89_v30 = vld [vmem:[%s3439_s3 + $0x10] sm:$0xff]  ;;  %v88_v31 = vld [vmem:[%s3439_s3 + $0x8] sm:$0xff] }
  0x15   :  { %114 = vmatpush.msra.mxu1 %v95_v17  ;;  %v45_v29 = vld [vmem:[%s3436_s0] sm:$0xff]  ;;  %v143_v33 = vld [vmem:[%s3441_s5 + $0x78] sm:$0xff]  ;;  %v142_v37 = vld [vmem:[%s3441_s5 + $0x70] sm:$0xff] }
  0x16   :  { %76 = vmatpush.msra.mxu0 %v51_v18  ;;  %v87_v32 = vld [vmem:[%s3439_s3] sm:$0xff]  ;;  %v1767_v34 = vld [vmem:[%s3441_s5 + $0xf8] sm:$0xff]  ;;  %148 = vmatpush.msra.mxu2 %v143_v33  ;;  %v1766_v38 = vld [vmem:[%s3441_s5 + $0xf0] sm:$0xff] }
  0x17   :  { %115 = vmatpush.msra.mxu1 %v94_v19  ;;  %v1784_v35 = vld [vmem:[%s3441_s5 + $0x178] sm:$0xff]  ;;  %191 = vmatpush.msra.mxu3 %v1767_v34  ;;  %v1783_v39 = vld [vmem:[%s3441_s5 + $0x170] sm:$0xff]  ;;  %v141_v41 = vld [vmem:[%s3441_s5 + $0x68] sm:$0xff] }
  0x18   :  { %77 = vmatpush.msra.mxu0 %v50_v20  ;;  %v1801_v36 = vld [vmem:[%s3441_s5 + $0x1f8] sm:$0xff]  ;;  %v1800_v40 = vld [vmem:[%s3441_s5 + $0x1f0] sm:$0xff]  ;;  %149 = vmatpush.msra.mxu2 %v142_v37  ;;  %v1765_v42 = vld [vmem:[%s3441_s5 + $0xe8] sm:$0xff] }
  0x19   :  { %116 = vmatpush.msra.mxu1 %v93_v21  ;;  %192 = vmatpush.msra.mxu3 %v1766_v38  ;;  %v1782_v43 = vld [vmem:[%s3441_s5 + $0x168] sm:$0xff]  ;;  %v140_v45 = vld [vmem:[%s3441_s5 + $0x60] sm:$0xff]  ;;  %v139_v49 = vld [vmem:[%s3441_s5 + $0x58] sm:$0xff] }
  0x1a   :  { %78 = vmatpush.msra.mxu0 %v49_v22  ;;  %v1799_v44 = vld [vmem:[%s3441_s5 + $0x1e8] sm:$0xff]  ;;  %v1764_v46 = vld [vmem:[%s3441_s5 + $0xe0] sm:$0xff]  ;;  %150 = vmatpush.msra.mxu2 %v141_v41  ;;  %v1763_v50 = vld [vmem:[%s3441_s5 + $0xd8] sm:$0xff] }
  0x1b   :  { %117 = vmatpush.msra.mxu1 %v92_v23  ;;  %193 = vmatpush.msra.mxu3 %v1765_v42  ;;  %v1781_v47 = vld [vmem:[%s3441_s5 + $0x160] sm:$0xff]  ;;  %v1780_v51 = vld [vmem:[%s3441_s5 + $0x158] sm:$0xff]  ;;  %v138_v53 = vld [vmem:[%s3441_s5 + $0x50] sm:$0xff] }
  0x1c   :  { %79 = vmatpush.msra.mxu0 %v48_v24  ;;  %v1798_v48 = vld [vmem:[%s3441_s5 + $0x1e0] sm:$0xff]  ;;  %151 = vmatpush.msra.mxu2 %v140_v45  ;;  %v1797_v52 = vld [vmem:[%s3441_s5 + $0x1d8] sm:$0xff]  ;;  %v1762_v54 = vld [vmem:[%s3441_s5 + $0xd0] sm:$0xff] }
  0x1d   :  { %118 = vmatpush.msra.mxu1 %v91_v25  ;;  %194 = vmatpush.msra.mxu3 %v1764_v46  ;;  %v1779_v55 = vld [vmem:[%s3441_s5 + $0x150] sm:$0xff]  ;;  %v137_v57 = vld [vmem:[%s3441_s5 + $0x48] sm:$0xff]  ;;  %v136_v61 = vld [vmem:[%s3441_s5 + $0x40] sm:$0xff]  ;;  %v2139_v46 = vmov 0.0  }
  0x1e   :  { %80 = vmatpush.msra.mxu0 %v47_v26  ;;  %152 = vmatpush.msra.mxu2 %v139_v49  ;;  %v1796_v56 = vld [vmem:[%s3441_s5 + $0x1d0] sm:$0xff]  ;;  %v1761_v58 = vld [vmem:[%s3441_s5 + $0xc8] sm:$0xff]  ;;  %v1760_v62 = vld [vmem:[%s3441_s5 + $0xc0] sm:$0xff] }
  0x1f   :  { %119 = vmatpush.msra.mxu1 %v90_v27  ;;  %195 = vmatpush.msra.mxu3 %v1763_v50  ;;  %v1778_v59 = vld [vmem:[%s3441_s5 + $0x148] sm:$0xff]  ;;  %v1777_v63 = vld [vmem:[%s3441_s5 + $0x140] sm:$0xff]  ;;  %v135_v1 = vld [vmem:[%s3441_s5 + $0x38] sm:$0xff] }
  0x20   :  { %81 = vmatpush.msra.mxu0 %v46_v28  ;;  %153 = vmatpush.msra.mxu2 %v138_v53  ;;  %v1795_v60 = vld [vmem:[%s3441_s5 + $0x1c8] sm:$0xff]  ;;  %v1794_v0 = vld [vmem:[%s3441_s5 + $0x1c0] sm:$0xff]  ;;  %v1759_v2 = vld [vmem:[%s3441_s5 + $0xb8] sm:$0xff] }
  0x21   :  { %82 = vmatmul.f32.vlgmr.msra.gmra.mxu0 %v45_v29  ;;  %120 = vmatpush.msra.mxu1 %v89_v30  ;;  %v1776_v3 = vld [vmem:[%s3441_s5 + $0x138] sm:$0xff]  ;;  %v134_v5 = vld [vmem:[%s3441_s5 + $0x30] sm:$0xff]  ;;  %v133_v9 = vld [vmem:[%s3441_s5 + $0x28] sm:$0xff] }
  0x22   :  { %234 = vmatpush.msrb.mxu0 %v1784_v35  ;;  %196 = vmatpush.msra.mxu3 %v1762_v54  ;;  %v1793_v4 = vld [vmem:[%s3441_s5 + $0x1b8] sm:$0xff]  ;;  %v1758_v6 = vld [vmem:[%s3441_s5 + $0xb0] sm:$0xff]  ;;  %v1757_v10 = vld [vmem:[%s3441_s5 + $0xa8] sm:$0xff] }
  0x23   :  { %121 = vmatpush.msra.mxu1 %v88_v31  ;;  %154 = vmatpush.msra.mxu2 %v137_v57  ;;  %v1775_v7 = vld [vmem:[%s3441_s5 + $0x130] sm:$0xff]  ;;  %v1774_v11 = vld [vmem:[%s3441_s5 + $0x128] sm:$0xff]  ;;  %v132_v13 = vld [vmem:[%s3441_s5 + $0x20] sm:$0xff] }
  0x24   :  { %235 = vmatpush.msrb.mxu0 %v1783_v39  ;;  %197 = vmatpush.msra.mxu3 %v1761_v58  ;;  %v1792_v8 = vld [vmem:[%s3441_s5 + $0x1b0] sm:$0xff]  ;;  %v1791_v12 = vld [vmem:[%s3441_s5 + $0x1a8] sm:$0xff]  ;;  %v1756_v14 = vld [vmem:[%s3441_s5 + $0xa0] sm:$0xff] }
  0x25   :  { %122 = vmatpush.msra.mxu1 %v87_v32  ;;  %155 = vmatpush.msra.mxu2 %v136_v61  ;;  %v1773_v15 = vld [vmem:[%s3441_s5 + $0x120] sm:$0xff]  ;;  %v131_v17 = vld [vmem:[%s3441_s5 + $0x18] sm:$0xff]  ;;  %v130_v25 = vld [vmem:[%s3441_s5 + $0x10] sm:$0xff] }
  0x26   :  { %236 = vmatpush.msrb.mxu0 %v1782_v43  ;;  %198 = vmatpush.msra.mxu3 %v1760_v62  ;;  %v1790_v16 = vld [vmem:[%s3441_s5 + $0x1a0] sm:$0xff]  ;;  %v1755_v18 = vld [vmem:[%s3441_s5 + $0x98] sm:$0xff]  ;;  %v1754_v26 = vld [vmem:[%s3441_s5 + $0x90] sm:$0xff] }
  0x27   :  { %277 = vmatpush.msrb.mxu1 %v1801_v36  ;;  %156 = vmatpush.msra.mxu2 %v135_v1  ;;  %v1772_v19 = vld [vmem:[%s3441_s5 + $0x118] sm:$0xff]  ;;  %v1975_v21 = vld [vmem:[%s3438_s2] ss:$0 sm:$0xff]  ;;  %v1771_v27 = vld [vmem:[%s3441_s5 + $0x110] sm:$0xff] }
  0x28   :  { %237 = vmatpush.msrb.mxu0 %v1781_v47  ;;  %199 = vmatpush.msra.mxu3 %v1759_v2  ;;  %v1789_v20 = vld [vmem:[%s3441_s5 + $0x198] sm:$0xff]  ;;  %v1788_v28 = vld [vmem:[%s3441_s5 + $0x190] sm:$0xff]  ;;  %v129_v29 = vld [vmem:[%s3441_s5 + $0x8] sm:$0xff] }
  0x29   :  { %278 = vmatpush.msrb.mxu1 %v1800_v40  ;;  %157 = vmatpush.msra.mxu2 %v134_v5  ;;  %v1753_v30 = vld [vmem:[%s3441_s5 + $0x88] sm:$0xff]  ;;  %v128_v33 = vld [vmem:[%s3441_s5] sm:$0xff]  ;;  %v302_v37 = vld [vmem:[%s3443_s7 + $0x18] sm:$0xff] }
  0x2a   :  { %238 = vmatpush.msrb.mxu0 %v1780_v51  ;;  %200 = vmatpush.msra.mxu3 %v1758_v6  ;;  %v1770_v31 = vld [vmem:[%s3441_s5 + $0x108] sm:$0xff]  ;;  %v1752_v34 = vld [vmem:[%s3441_s5 + $0x80] sm:$0xff]  ;;  %v301_v38 = vld [vmem:[%s3443_s7 + $0x10] sm:$0xff] }
  0x2b   :  { %279 = vmatpush.msrb.mxu1 %v1799_v44  ;;  %158 = vmatpush.msra.mxu2 %v133_v9  ;;  %v1787_v32 = vld [vmem:[%s3441_s5 + $0x188] sm:$0xff]  ;;  %v1769_v35 = vld [vmem:[%s3441_s5 + $0x100] sm:$0xff]  ;;  %v1806_v45 = vld [vmem:[%s3443_s7 + $0x38] sm:$0xff] }
  0x2c   :  { %239 = vmatpush.msrb.mxu0 %v1779_v55  ;;  %201 = vmatpush.msra.mxu3 %v1757_v10  ;;  %v1786_v36 = vld [vmem:[%s3441_s5 + $0x180] sm:$0xff]  ;;  %v300_v43 = vld [vmem:[%s3443_s7 + $0x8] sm:$0xff]  ;;  %v1821_v47 = vld [vmem:[%s3443_s7 + $0x78] sm:$0xff] }
  0x2d   :  { %280 = vmatpush.msrb.mxu1 %v1798_v48  ;;  %159 = vmatpush.msra.mxu2 %v132_v13  ;;  %v1976_v39 = vld [vmem:[%s3440_s4] ss:$0 sm:$0xff]  ;;  %v1817_v48 = vld [vmem:[%s3443_s7 + $0x58] sm:$0xff]  ;;  %v1805_v49 = vld [vmem:[%s3443_s7 + $0x30] sm:$0xff] }
  0x2e   :  { %240 = vmatpush.msrb.mxu0 %v1778_v59  ;;  %202 = vmatpush.msra.mxu3 %v1756_v14  ;;  %v299_v44 = vld [vmem:[%s3443_s7] sm:$0xff]  ;;  %v1820_v50 = vld [vmem:[%s3443_s7 + $0x70] sm:$0xff]  ;;  %v1819_v53 = vld [vmem:[%s3443_s7 + $0x68] sm:$0xff] }
  0x2f   :  { %281 = vmatpush.msrb.mxu1 %v1797_v52  ;;  %160 = vmatpush.msra.mxu2 %v131_v17  ;;  %v1816_v51 = vld [vmem:[%s3443_s7 + $0x50] sm:$0xff]  ;;  %v1804_v52 = vld [vmem:[%s3443_s7 + $0x28] sm:$0xff]  ;;  %v1803_v55 = vld [vmem:[%s3443_s7 + $0x20] sm:$0xff] }
  0x30   :  { %241 = vmatpush.msrb.mxu0 %v1777_v63  ;;  %203 = vmatpush.msra.mxu3 %v1755_v18  ;;  %v1815_v54 = vld [vmem:[%s3443_s7 + $0x48] sm:$0xff]  ;;  %v1814_v57 = vld [vmem:[%s3443_s7 + $0x40] sm:$0xff]  ;;  %v477_v6 = vld [vmem:[%s3445_s9 + $0x38] sm:$0xff] }
  0x31   :  { %282 = vmatpush.msrb.mxu1 %v1796_v56  ;;  %161 = vmatpush.msra.mxu2 %v130_v25  ;;  %v1818_v56 = vld [vmem:[%s3443_s7 + $0x60] sm:$0xff]  ;;  %v1866_v9 = vld [vmem:[%s3445_s9 + $0xf0] sm:$0xff]  ;;  %v1836_v10 = vld [vmem:[%s3445_s9 + $0x78] sm:$0xff] }
  0x32   :  { %242 = vmatpush.msrb.mxu0 %v1776_v3  ;;  %204 = vmatpush.msra.mxu3 %v1754_v26  ;;  %v1979_v58 = vld [vmem:[%s3442_s6] ss:$0 sm:$0xff]  ;;  %v1980_v59 = vld [vmem:[%s3442_s6 + $0x1] ss:$0 sm:$0xff]  ;;  %v1977_v2 = vld [vmem:[%s3442_s6 + $0x2] ss:$0 sm:$0xff] }
  0x33   :  { %283 = vmatpush.msrb.mxu1 %v1795_v60  ;;  %162 = vmatpush.msra.mxu2 %v129_v29  ;;  %v1978_v13 = vld [vmem:[%s3442_s6 + $0x3] ss:$0 sm:$0xff]  ;;  %v473_v18 = vld [vmem:[%s3445_s9 + $0x18] sm:$0xff]  ;;  %v1834_v25 = vld [vmem:[%s3445_s9 + $0x68] sm:$0xff]  ;;  %s2142_s6 = smov 8  }
  0x34   :  { %243 = vmatpush.msrb.mxu0 %v1775_v7  ;;  %205 = vmatpush.msra.mxu3 %v1753_v30  ;;  %v1867_v7 = vld [vmem:[%s3445_s9 + $0xf8] sm:$0xff]  ;;  %v474_v14 = vld [vmem:[%s3445_s9 + $0x20] sm:$0xff]  ;;  %v471_v26 = vld [vmem:[%s3445_s9 + $0x8] sm:$0xff] }
  0x35   :  { %284 = vmatpush.msrb.mxu1 %v1794_v0  ;;  %163 = vmatpush.msra.mxu2 %v128_v33  ;;  %v1833_v29 = vld [vmem:[%s3445_s9 + $0x60] sm:$0xff]  ;;  %v1832_v33 = vld [vmem:[%s3445_s9 + $0x58] sm:$0xff] }
  0x36   :  { %244 = vmatpush.msrb.mxu0 %v1774_v11  ;;  %206 = vmatpush.msra.mxu3 %v1752_v34  ;;  %v475_v11 = vld [vmem:[%s3445_s9 + $0x28] sm:$0xff]  ;;  %v470_v30 = vld [vmem:[%s3445_s9] sm:$0xff] }
  0x37   :  { %285 = vmatpush.msrb.mxu1 %v1793_v4  ;;  %333 = vmatpush.msrb.mxu2 %v1806_v45  ;;  %v1860_v34 = vld [vmem:[%s3445_s9 + $0xc0] sm:$0xff] }
  0x38   :  { %245 = vmatpush.msrb.mxu0 %v1773_v15  ;;  %365 = vmatpush.msrb.mxu3 %v302_v37  ;;  %v1854_v37 = vld [vmem:[%s3445_s9 + $0x90] sm:$0xff] }
  0x39   :  { %286 = vmatpush.msrb.mxu1 %v1792_v8  ;;  %334 = vmatpush.msrb.mxu2 %v1805_v49  ;;  %v476_v8 = vld [vmem:[%s3445_s9 + $0x30] sm:$0xff] }
  0x3a   :  { %246 = vmatpush.msrb.mxu0 %v1772_v19  ;;  %366 = vmatpush.msrb.mxu3 %v301_v38  ;;  %v1864_v19 = vld [vmem:[%s3445_s9 + $0xe0] sm:$0xff]  ;;  %v1830_v38 = vld [vmem:[%s3445_s9 + $0x48] sm:$0xff] }
  0x3b   :  { %287 = vmatpush.msrb.mxu1 %v1791_v12  ;;  %335 = vmatpush.msrb.mxu2 %v1804_v52  ;;  %v1865_v12 = vld [vmem:[%s3445_s9 + $0xe8] sm:$0xff] }
  0x3c   :  { %247 = vmatpush.msrb.mxu0 %v1771_v27  ;;  %367 = vmatpush.msrb.mxu3 %v300_v43  ;;  %v1862_v27 = vld [vmem:[%s3445_s9 + $0xd0] sm:$0xff]  ;;  %v2686_v43 = vld [vmem:[%s3444_s8] ss:$0 sm:$0xff]  ;;  %s1740_s8 = sshll.u32 %s3449_s13, 4  ;;  %s1741_s8 = int_to_ptr.hbm [resolvable:$true] %s1740_s8 }
  0x3d   :  { %288 = vmatpush.msrb.mxu1 %v1790_v16  ;;  %336 = vmatpush.msrb.mxu2 %v1803_v55 }
  0x3e   :  { %248 = vmatpush.msrb.mxu0 %v1770_v31  ;;  %368 = vmatpush.msrb.mxu3 %v299_v44  ;;  %v1861_v31 = vld [vmem:[%s3445_s9 + $0xc8] sm:$0xff] }
  0x3f   :  { %289 = vmatpush.msrb.mxu1 %v1789_v20  ;;  %v1859_v20 = vld [vmem:[%s3445_s9 + $0xb8] sm:$0xff] }
  0x40   :  { %249 = vmatpush.msrb.mxu0 %v1769_v35  ;;  %v1855_v35 = vld [vmem:[%s3445_s9 + $0x98] sm:$0xff] }
  0x41   :  { %290 = vmatpush.msrb.mxu1 %v1788_v28  ;;  %v1857_v28 = vld [vmem:[%s3445_s9 + $0xa8] sm:$0xff] }
  0x42   :  { %411 = vmatpush.msra.mxu0 %v1821_v47 }
  0x43   :  { %291 = vmatpush.msrb.mxu1 %v1787_v32  ;;  %v1856_v32 = vld [vmem:[%s3445_s9 + $0xa0] sm:$0xff] }
  0x44   :  { %412 = vmatpush.msra.mxu0 %v1820_v50 }
  0x45   :  { %292 = vmatpush.msrb.mxu1 %v1786_v36  ;;  %v1831_v36 = vld [vmem:[%s3445_s9 + $0x50] sm:$0xff] }
  0x46   :  { %413 = vmatpush.msra.mxu0 %v1819_v53 }
  0x48   :  { %414 = vmatpush.msra.mxu0 %v1818_v56 }
  0x9e   :  { %v83_v22 = vpop.f32.mrf.mxu0 }
  0x9f   :  { %v84_v23 = vadd.f32 %v1975_v21, %v83_v22  ;;  %v1835_v21 = vld [vmem:[%s3445_s9 + $0x70] sm:$0xff] }
  0xa0   :  { %v472_v22 = vld [vmem:[%s3445_s9 + $0x10] sm:$0xff] }
  0xa1   :  { %v86_v24 = vmax.f32 %v84_v23, 0.0  ;;  %v1863_v23 = vld [vmem:[%s3445_s9 + $0xd8] sm:$0xff] }
  0xa3   :  { %123 = vmatmul.f32.vlgmr.msra.gmra.mxu1 %v86_v24  ;;  %v1858_v24 = vld [vmem:[%s3445_s9 + $0xb0] sm:$0xff] }
  0xa4   :  { %440 = vmatpush.msra.mxu1 %v1817_v48 }
  0xa6   :  { %441 = vmatpush.msra.mxu1 %v1816_v51 }
  0xa8   :  { %442 = vmatpush.msra.mxu1 %v1815_v54 }
  0xaa   :  { %443 = vmatpush.msra.mxu1 %v1814_v57 }
 0x120   :  { %v124_v40 = vpop.f32.mrf.mxu1 }
 0x121   :  { %v125_v41 = vadd.f32 %v1976_v39, %v124_v40  ;;  %v1853_v39 = vld [vmem:[%s3445_s9 + $0x88] sm:$0xff]  ;;  %v1829_v40 = vld [vmem:[%s3445_s9 + $0x40] sm:$0xff] }
 0x123   :  { %v127_v42 = vmax.f32 %v125_v41, 0.0  ;;  %v1852_v41 = vld [vmem:[%s3445_s9 + $0x80] sm:$0xff]  ;;  %s2141_s9 = smov 128  }
 0x125   :  { %164 = vmatmul.f32.vlgmr.msra.gmra.mxu2 %v127_v42  ;;  %207 = vmatmul.f32.vlgmr.msra.gmra.mxu3 %v127_v42 }
 0x126   :  { %250 = vmatmul.f32.vlgmr.msrb.gmra.mxu0 %v127_v42  ;;  %293 = vmatmul.f32.vlgmr.msrb.gmra.mxu1 %v127_v42 }
 0x127   :  { %1967 = vmatpush.msra.mxu3 %v1817_v48  ;;  %1963 = vmatpush.msra.mxu2 %v1821_v47 }
 0x128   :  { %633 = vmatpush.msrb.mxu0 %v1867_v7  ;;  %674 = vmatpush.msrb.mxu1 %v1859_v20  ;;  %v1913_v20 = vld [vmem:[%s3447_s11 + $0x170] sm:$0xff] }
 0x129   :  { %1968 = vmatpush.msra.mxu3 %v1816_v51  ;;  %1964 = vmatpush.msra.mxu2 %v1820_v50 }
 0x12a   :  { %634 = vmatpush.msrb.mxu0 %v1866_v9  ;;  %675 = vmatpush.msrb.mxu1 %v1858_v24  ;;  %v1898_v9 = vld [vmem:[%s3447_s11 + $0xf8] sm:$0xff] }
 0x12b   :  { %1969 = vmatpush.msra.mxu3 %v1815_v54  ;;  %1965 = vmatpush.msra.mxu2 %v1819_v53 }
 0x12c   :  { %635 = vmatpush.msrb.mxu0 %v1865_v12  ;;  %676 = vmatpush.msrb.mxu1 %v1857_v28  ;;  %v1911_v28 = vld [vmem:[%s3447_s11 + $0x160] sm:$0xff] }
 0x12d   :  { %369 = vmatmul.f32.vlgmr.msrb.gmra.mxu3 %v2139_v46  ;;  %1966 = vmatpush.msra.mxu2 %v1818_v56 }
 0x12e   :  { %1970 = vmatpush.msra.mxu3 %v1814_v57  ;;  %636 = vmatpush.msrb.mxu0 %v1864_v19 }
 0x12f   :  { %677 = vmatpush.msrb.mxu1 %v1856_v32  ;;  %v1910_v32 = vld [vmem:[%s3447_s11 + $0x158] sm:$0xff] }
 0x130   :  { %563 = vmatpush.msrb.mxu3 %v477_v6  ;;  %637 = vmatpush.msrb.mxu0 %v1863_v23 }
 0x131   :  { %678 = vmatpush.msrb.mxu1 %v1855_v35  ;;  %v742_v35 = vld [vmem:[%s3447_s11 + $0x50] sm:$0xff] }
 0x132   :  { %564 = vmatpush.msrb.mxu3 %v476_v8  ;;  %638 = vmatpush.msrb.mxu0 %v1862_v27  ;;  %v1927_v27 = vld [vmem:[%s3447_s11 + $0x1e0] sm:$0xff] }
 0x133   :  { %679 = vmatpush.msrb.mxu1 %v1854_v37  ;;  %v1925_v37 = vld [vmem:[%s3447_s11 + $0x1d0] sm:$0xff] }
 0x134   :  { %565 = vmatpush.msrb.mxu3 %v475_v11  ;;  %639 = vmatpush.msrb.mxu0 %v1861_v31  ;;  %v1897_v11 = vld [vmem:[%s3447_s11 + $0xf0] sm:$0xff]  ;;  %v1926_v31 = vld [vmem:[%s3447_s11 + $0x1d8] sm:$0xff] }
 0x135   :  { %680 = vmatpush.msrb.mxu1 %v1853_v39 }
 0x136   :  { %566 = vmatpush.msrb.mxu3 %v474_v14  ;;  %640 = vmatpush.msrb.mxu0 %v1860_v34  ;;  %v1930_v14 = vld [vmem:[%s3447_s11 + $0x1f8] sm:$0xff]  ;;  %v1893_v34 = vld [vmem:[%s3447_s11 + $0xd0] sm:$0xff] }
 0x137   :  { %681 = vmatpush.msrb.mxu1 %v1852_v41 }
 0x138   :  { %567 = vmatpush.msrb.mxu3 %v473_v18  ;;  %v1929_v18 = vld [vmem:[%s3447_s11 + $0x1f0] sm:$0xff] }
 0x13a   :  { %568 = vmatpush.msrb.mxu3 %v472_v22  ;;  %v1912_v22 = vld [vmem:[%s3447_s11 + $0x168] sm:$0xff] }
 0x13c   :  { %569 = vmatpush.msrb.mxu3 %v471_v26  ;;  %v744_v26 = vld [vmem:[%s3447_s11 + $0x60] sm:$0xff] }
 0x13e   :  { %570 = vmatpush.msrb.mxu3 %v470_v30  ;;  %v743_v30 = vld [vmem:[%s3447_s11 + $0x58] sm:$0xff] }
 0x1a3   :  { %v251_v3 = vpop.f32.mrf.mxu0  ;;  %v294_v15 = vpop.f32.mrf.mxu1 }
 0x1a4   :  { %v252_v4 = vadd.f32 %v1977_v2, %v251_v3  ;;  %v295_v16 = vadd.f32 %v1978_v13, %v294_v15  ;;  %v746_v13 = vld [vmem:[%s3447_s11 + $0x70] sm:$0xff]  ;;  %v1914_v15 = vld [vmem:[%s3447_s11 + $0x178] sm:$0xff] }
 0x1a6   :  { %v254_v5 = vmax.f32 %v252_v4, 0.0  ;;  %v297_v17 = vmax.f32 %v295_v16, 0.0  ;;  %v1896_v16 = vld [vmem:[%s3447_s11 + $0xe8] sm:$0xff] }
 0x1a8   :  { %v165_v60 = vpop.f32.mrf.mxu2  ;;  %v208_v61 = vpop.f32.mrf.mxu3 }
 0x1a9   :  { %v166_v62 = vadd.f32 %v1979_v58, %v165_v60  ;;  %v209_v63 = vadd.f32 %v1980_v59, %v208_v61 }
 0x1ab   :  { %v168_v0 = vmax.f32 %v166_v62, 0.0  ;;  %v211_v1 = vmax.f32 %v209_v63, 0.0 }
 0x1ad   :  { %1807 = vmatmul.msk.f32.vlgmr.msrb.gmra.mxu2 %vm308_vm0, %v168_v0  ;;  %1811 = vmatmul.msk.f32.gmra.mxu3 %vm308_vm0, %v168_v0 }
 0x1ae   :  { %1822 = vmatmul.msk.f32.vlgmr.msra.gmra.mxu0 %vm308_vm0, %v211_v1  ;;  %1825 = vmatmul.msk.f32.vlgmr.msra.gmra.mxu1 %vm308_vm0, %v168_v0 }
 0x1af   :  { %520 = vmatpush.msrb.mxu2 %v1836_v10  ;;  %v747_v10 = vld [vmem:[%s3447_s11 + $0x78] sm:$0xff]  ;;  %948 = vmatpush.msra.mxu0 %v1930_v14 }
 0x1b0   :  { %v370_v42 = vpop.f32.mrf.mxu3  ;;  %1013 = vmatpush.msra.mxu1 %v1914_v15  ;;  %v1902_v14 = vld [vmem:[%s3447_s11 + $0x118] sm:$0xff]  ;;  %v1884_v15 = vld [vmem:[%s3447_s11 + $0x88] sm:$0xff] }
 0x1b1   :  { %521 = vmatpush.msrb.mxu2 %v1835_v21  ;;  %949 = vmatpush.msra.mxu0 %v1929_v18  ;;  %v1928_v21 = vld [vmem:[%s3447_s11 + $0x1e8] sm:$0xff] }
 0x1b2   :  { %1014 = vmatpush.msra.mxu1 %v1913_v20  ;;  %v1900_v18 = vld [vmem:[%s3447_s11 + $0x108] sm:$0xff]  ;;  %v1899_v20 = vld [vmem:[%s3447_s11 + $0x100] sm:$0xff] }
 0x1b3   :  { %522 = vmatpush.msrb.mxu2 %v1834_v25  ;;  %v1895_v25 = vld [vmem:[%s3447_s11 + $0xe0] sm:$0xff]  ;;  %950 = vmatpush.msra.mxu0 %v1928_v21 }
 0x1b4   :  { %1015 = vmatpush.msra.mxu1 %v1912_v22  ;;  %v2923_v21 = vld [vmem:[%s3446_s10] ss:$0 sm:$0xff] }
 0x1b5   :  { %1808 = vmatmul.msk.f32.gmra.mxu2 %vm308_vm0, %v211_v1  ;;  %1812 = vmatmul.msk.f32.gmra.mxu3 %vm308_vm0, %v211_v1 }
 0x1b6   :  { %1823 = vmatmul.msk.f32.gmra.mxu0 %vm308_vm0, %v254_v5  ;;  %1826 = vmatmul.msk.f32.gmra.mxu1 %vm308_vm0, %v211_v1 }
 0x1b7   :  { %523 = vmatpush.msrb.mxu2 %v1833_v29  ;;  %v1894_v29 = vld [vmem:[%s3447_s11 + $0xd8] sm:$0xff]  ;;  %951 = vmatpush.msra.mxu0 %v1927_v27 }
 0x1b8   :  { %1016 = vmatpush.msra.mxu1 %v1911_v28 }
 0x1b9   :  { %524 = vmatpush.msrb.mxu2 %v1832_v33  ;;  %952 = vmatpush.msra.mxu0 %v1926_v31 }
 0x1ba   :  { %1017 = vmatpush.msra.mxu1 %v1910_v32 }
 0x1bb   :  { %525 = vmatpush.msrb.mxu2 %v1831_v36  ;;  %953 = vmatpush.msra.mxu0 %v1925_v37 }
 0x1bd   :  { %1809 = vmatmul.msk.f32.gmra.mxu2 %vm308_vm0, %v254_v5  ;;  %1813 = vmatmul.msk.f32.gmra.mxu3 %vm308_vm0, %v254_v5 }
 0x1be   :  { %526 = vmatpush.msrb.mxu2 %v1830_v38  ;;  %v1909_v38 = vld [vmem:[%s3447_s11 + $0x150] sm:$0xff] }
 0x1bf   :  { %1018 = vmatpush.msra.mxu1 %v1909_v38 }
 0x1c0   :  { %527 = vmatpush.msrb.mxu2 %v1829_v40 }
 0x1c5   :  { %1810 = vmatmul.msk.f32.gmra.mxu2 %vm308_vm0, %v297_v17  ;;  %1827 = vmatmul.msk.f32.vlgmr.msra.gmra.mxu3 %vm308_vm0, %v254_v5 }
 0x1c6   :  { %830 = vmatpush.msra.mxu3 %v747_v10  ;;  %v1917_v10 = vld [vmem:[%s3447_s11 + $0x190] sm:$0xff] }
 0x1c8   :  { %831 = vmatpush.msra.mxu3 %v746_v13  ;;  %v1885_v13 = vld [vmem:[%s3447_s11 + $0x90] sm:$0xff] }
 0x1cd   :  { %1824 = vmatmul.msk.f32.vlgmr.msra.gmra.mxu2 %vm308_vm0, %v297_v17  ;;  %1828 = vmatmul.msk.f32.gmra.mxu3 %vm308_vm0, %v297_v17  ;;  %v745_v17 = vld [vmem:[%s3447_s11 + $0x68] sm:$0xff] }
 0x1ce   :  { %765 = vmatpush.msra.mxu2 %v1898_v9  ;;  %832 = vmatpush.msra.mxu3 %v745_v17  ;;  %v733_v9 = vld [vmem:[%s3447_s11 + $0x8] sm:$0xff]  ;;  %v1901_v17 = vld [vmem:[%s3447_s11 + $0x110] sm:$0xff] }
 0x1d0   :  { %766 = vmatpush.msra.mxu2 %v1897_v11  ;;  %833 = vmatpush.msra.mxu3 %v744_v26  ;;  %v732_v11 = vld [vmem:[%s3447_s11] sm:$0xff] }
 0x1d2   :  { %767 = vmatpush.msra.mxu2 %v1896_v16  ;;  %834 = vmatpush.msra.mxu3 %v743_v30  ;;  %v1915_v16 = vld [vmem:[%s3447_s11 + $0x180] sm:$0xff] }
 0x1d4   :  { %768 = vmatpush.msra.mxu2 %v1895_v25  ;;  %835 = vmatpush.msra.mxu3 %v742_v35 }
 0x1d5   :  { %424 = vmatmul.f32.gmra.mxu2 %v2139_v46  ;;  %571 = vmatmul.f32.vlgmr.msrb.gmra.mxu3 %v2139_v46 }
 0x1d6   :  { %769 = vmatpush.msra.mxu2 %v1894_v29 }
 0x1d8   :  { %770 = vmatpush.msra.mxu2 %v1893_v34 }
 0x22b   :  { %v416_v44 = vpop.f32.mrf.mxu0  ;;  %v445_v45 = vpop.f32.mrf.mxu1 }
 0x22c   :  { %v446_v47 = vadd.f32 %v445_v45, %v416_v44  ;;  %v741_v44 = vld [vmem:[%s3447_s11 + $0x48] sm:$0xff] }
 0x22d   :  { %v1924_v45 = vld [vmem:[%s3447_s11 + $0x1c8] sm:$0xff]  ;;  %836 = vmatpush.msra.mxu3 %v741_v44 }
 0x22e   :  { %v457_v48 = vadd.f32 %v2686_v43, %v446_v47  ;;  %v1908_v47 = vld [vmem:[%s3447_s11 + $0x148] sm:$0xff]  ;;  %954 = vmatpush.msra.mxu0 %v1924_v45 }
 0x22f   :  { %1019 = vmatpush.msra.mxu1 %v1908_v47 }
 0x230   :  { %v465_v49 = vmax.f32 %v457_v48, 0.0  ;;  %v338_v50 = vpop.f32.mrf.mxu2  ;;  %v373_v52 = vpop.f32.mrf.mxu3  ;;  %v1891_v48 = vld [vmem:[%s3447_s11 + $0xc0] sm:$0xff] }
 0x231   :  { %v371_v51 = vadd.f32 %v370_v42, %v338_v50  ;;  %v1892_v42 = vld [vmem:[%s3447_s11 + $0xc8] sm:$0xff]  ;;  %v1923_v50 = vld [vmem:[%s3447_s11 + $0x1c0] sm:$0xff] }
 0x232   :  { %1868 = vmatmul.msk.f32.vlgmr.msrb.gmra.mxu0 %vm487_vm1, %v465_v49  ;;  %771 = vmatpush.msra.mxu2 %v1892_v42 }
 0x233   :  { %v385_v53 = vadd.f32 %v2686_v43, %v371_v51  ;;  %v419_v57 = vpop.f32.mrf.mxu0  ;;  %v448_v58 = vpop.f32.mrf.mxu1  ;;  %v1907_v51 = vld [vmem:[%s3447_s11 + $0x140] sm:$0xff]  ;;  %955 = vmatpush.msra.mxu0 %v1923_v50 }
 0x234   :  { %v449_v62 = vadd.f32 %v448_v58, %v419_v57  ;;  %772 = vmatpush.msra.mxu2 %v1891_v48  ;;  %1020 = vmatpush.msra.mxu1 %v1907_v51  ;;  %v1889_v57 = vld [vmem:[%s3447_s11 + $0xb0] sm:$0xff] }
 0x235   :  { %v461_v54 = vmax.f32 %v385_v53, 0.0  ;;  %v1890_v53 = vld [vmem:[%s3447_s11 + $0xb8] sm:$0xff]  ;;  %v738_v58 = vld [vmem:[%s3447_s11 + $0x30] sm:$0xff] }
 0x236   :  { %v458_v0 = vadd.f32 %v2686_v43, %v449_v62  ;;  %773 = vmatpush.msra.mxu2 %v1890_v53  ;;  %v737_v62 = vld [vmem:[%s3447_s11 + $0x28] sm:$0xff] }
 0x237   :  { %1837 = vmatmul.msk.f32.vlgmr.msrb.gmra.mxu2 %vm487_vm1, %v461_v54  ;;  %1845 = vmatmul.msk.f32.gmra.mxu3 %vm487_vm1, %v461_v54 }
 0x238   :  { %1875 = vmatmul.msk.f32.vlgmr.msrb.gmra.mxu1 %vm487_vm1, %v461_v54  ;;  %v341_v55 = vpop.f32.mrf.mxu2  ;;  %v376_v60 = vpop.f32.mrf.mxu3  ;;  %v466_v1 = vmax.f32 %v458_v0, 0.0  ;;  %v739_v54 = vld [vmem:[%s3447_s11 + $0x38] sm:$0xff]  ;;  %774 = vmatpush.msra.mxu2 %v1889_v57  ;;  %v736_v0 = vld [vmem:[%s3447_s11 + $0x20] sm:$0xff] }
 0x239   :  { %v374_v56 = vadd.f32 %v373_v52, %v341_v55  ;;  %v1922_v55 = vld [vmem:[%s3447_s11 + $0x1b8] sm:$0xff] }
 0x23a   :  { %956 = vmatpush.msra.mxu0 %v1922_v55 }
 0x23b   :  { %v386_v59 = vadd.f32 %v2686_v43, %v374_v56 }
 0x23d   :  { %v462_v61 = vmax.f32 %v386_v59, 0.0  ;;  %v1921_v59 = vld [vmem:[%s3447_s11 + $0x1b0] sm:$0xff] }
 0x23e   :  { %957 = vmatpush.msra.mxu0 %v1921_v59 }
 0x23f   :  { %1838 = vmatmul.msk.f32.gmra.mxu2 %vm487_vm1, %v465_v49  ;;  %1846 = vmatmul.msk.f32.gmra.mxu3 %vm487_vm1, %v465_v49 }
 0x240   :  { %1869 = vmatmul.msk.f32.gmra.mxu0 %vm487_vm1, %v462_v61  ;;  %1876 = vmatmul.msk.f32.gmra.mxu1 %vm487_vm1, %v465_v49  ;;  %v344_v63 = vpop.f32.mrf.mxu2  ;;  %v379_v3 = vpop.f32.mrf.mxu3  ;;  %v740_v49 = vld [vmem:[%s3447_s11 + $0x40] sm:$0xff] }
 0x241   :  { %v377_v2 = vadd.f32 %v376_v60, %v344_v63  ;;  %837 = vmatpush.msra.mxu3 %v740_v49  ;;  %v1905_v60 = vld [vmem:[%s3447_s11 + $0x130] sm:$0xff]  ;;  %v1887_v63 = vld [vmem:[%s3447_s11 + $0xa0] sm:$0xff] }
 0x243   :  { %v387_v5 = vadd.f32 %v2686_v43, %v377_v2  ;;  %838 = vmatpush.msra.mxu3 %v739_v54  ;;  %v1904_v2 = vld [vmem:[%s3447_s11 + $0x128] sm:$0xff] }
 0x245   :  { %v463_v6 = vmax.f32 %v387_v5, 0.0  ;;  %839 = vmatpush.msra.mxu3 %v738_v58  ;;  %v1919_v5 = vld [vmem:[%s3447_s11 + $0x1a0] sm:$0xff] }
 0x247   :  { %1839 = vmatmul.msk.f32.gmra.mxu2 %vm487_vm1, %v462_v61  ;;  %1847 = vmatmul.msk.f32.gmra.mxu3 %vm487_vm1, %v462_v61 }
 0x248   :  { %1870 = vmatmul.msk.f32.gmra.mxu0 %vm487_vm1, %v466_v1  ;;  %1877 = vmatmul.msk.f32.gmra.mxu1 %vm487_vm1, %v462_v61  ;;  %v347_v4 = vpop.f32.mrf.mxu2  ;;  %v451_v7 = vpop.f32.mrf.mxu3  ;;  %v1888_v61 = vld [vmem:[%s3447_s11 + $0xa8] sm:$0xff] }
 0x249   :  { %v380_v24 = vadd.f32 %v379_v3, %v347_v4  ;;  %775 = vmatpush.msra.mxu2 %v1888_v61  ;;  %840 = vmatpush.msra.mxu3 %v737_v62  ;;  %v1886_v3 = vld [vmem:[%s3447_s11 + $0x98] sm:$0xff] }
 0x24a   :  { %v735_v4 = vld [vmem:[%s3447_s11 + $0x18] sm:$0xff] }
 0x24b   :  { %v388_v33 = vadd.f32 %v2686_v43, %v380_v24  ;;  %776 = vmatpush.msra.mxu2 %v1887_v63  ;;  %841 = vmatpush.msra.mxu3 %v736_v0 }
 0x24d   :  { %v464_v40 = vmax.f32 %v388_v33, 0.0  ;;  %777 = vmatpush.msra.mxu2 %v1886_v3  ;;  %842 = vmatpush.msra.mxu3 %v735_v4 }
 0x24f   :  { %1840 = vmatmul.msk.f32.gmra.mxu2 %vm487_vm1, %v466_v1  ;;  %1848 = vmatmul.msk.f32.gmra.mxu3 %vm487_vm1, %v466_v1 }
 0x250   :  { %1871 = vmatmul.msk.f32.gmra.mxu0 %vm487_vm1, %v463_v6  ;;  %1878 = vmatmul.msk.f32.gmra.mxu1 %vm487_vm1, %v466_v1  ;;  %v422_v8 = vpop.f32.mrf.mxu2  ;;  %v454_v39 = vpop.f32.mrf.mxu3  ;;  %v1920_v1 = vld [vmem:[%s3447_s11 + $0x1a8] sm:$0xff] }
 0x251   :  { %v452_v12 = vadd.f32 %v451_v7, %v422_v8  ;;  %958 = vmatpush.msra.mxu0 %v1920_v1  ;;  %v734_v7 = vld [vmem:[%s3447_s11 + $0x10] sm:$0xff]  ;;  %v1918_v8 = vld [vmem:[%s3447_s11 + $0x198] sm:$0xff]  ;;  %778 = vmatpush.msra.mxu2 %v1885_v13 }
 0x252   :  { %843 = vmatpush.msra.mxu3 %v734_v7 }
 0x253   :  { %v459_v19 = vadd.f32 %v2686_v43, %v452_v12  ;;  %959 = vmatpush.msra.mxu0 %v1919_v5  ;;  %v1916_v12 = vld [vmem:[%s3447_s11 + $0x188] sm:$0xff]  ;;  %779 = vmatpush.msra.mxu2 %v1884_v15 }
 0x254   :  { %844 = vmatpush.msra.mxu3 %v733_v9 }
 0x255   :  { %v467_v23 = vmax.f32 %v459_v19, 0.0  ;;  %960 = vmatpush.msra.mxu0 %v1918_v8  ;;  %v1883_v19 = vld [vmem:[%s3447_s11 + $0x80] sm:$0xff] }
 0x256   :  { %845 = vmatpush.msra.mxu3 %v732_v11  ;;  %780 = vmatpush.msra.mxu2 %v1883_v19 }
 0x257   :  { %1841 = vmatmul.msk.f32.gmra.mxu2 %vm487_vm1, %v463_v6  ;;  %1849 = vmatmul.msk.f32.gmra.mxu3 %vm487_vm1, %v463_v6 }
 0x258   :  { %1872 = vmatmul.msk.f32.gmra.mxu0 %vm487_vm1, %v467_v23  ;;  %1879 = vmatmul.msk.f32.gmra.mxu1 %vm487_vm1, %v463_v6  ;;  %v425_v36 = vpop.f32.mrf.mxu2  ;;  %v1903_v6 = vld [vmem:[%s3447_s11 + $0x120] sm:$0xff]  ;;  %v572_v25 = vpop.f32.mrf.mxu3 }
 0x259   :  { %v455_v41 = vadd.f32 %v454_v39, %v425_v36  ;;  %961 = vmatpush.msra.mxu0 %v1917_v10 }
 0x25b   :  { %v460_v52 = vadd.f32 %v2686_v43, %v455_v41  ;;  %v1906_v43 = vld [vmem:[%s3447_s11 + $0x138] sm:$0xff]  ;;  %962 = vmatpush.msra.mxu0 %v1916_v12 }
 0x25c   :  { %1021 = vmatpush.msra.mxu1 %v1906_v43 }
 0x25d   :  { %v468_v56 = vmax.f32 %v460_v52, 0.0  ;;  %963 = vmatpush.msra.mxu0 %v1915_v16 }
 0x25e   :  { %1022 = vmatpush.msra.mxu1 %v1905_v60 }
 0x25f   :  { %1842 = vmatmul.msk.f32.gmra.mxu2 %vm487_vm1, %v467_v23  ;;  %1850 = vmatmul.msk.f32.gmra.mxu3 %vm487_vm1, %v467_v23 }
 0x260   :  { %1873 = vmatmul.msk.f32.gmra.mxu0 %vm487_vm1, %v464_v40  ;;  %1880 = vmatmul.msk.f32.gmra.mxu1 %vm487_vm1, %v467_v23 }
 0x261   :  { %1023 = vmatpush.msra.mxu1 %v1904_v2 }
 0x263   :  { %1024 = vmatpush.msra.mxu1 %v1903_v6 }
 0x265   :  { %1025 = vmatpush.msra.mxu1 %v1902_v14 }
 0x267   :  { %1843 = vmatmul.msk.f32.gmra.mxu2 %vm487_vm1, %v464_v40  ;;  %1851 = vmatmul.msk.f32.gmra.mxu3 %vm487_vm1, %v464_v40 }
 0x268   :  { %1874 = vmatmul.msk.f32.gmra.mxu0 %vm487_vm1, %v468_v56  ;;  %1881 = vmatmul.msk.f32.gmra.mxu1 %vm487_vm1, %v464_v40 }
 0x269   :  { %1026 = vmatpush.msra.mxu1 %v1901_v17 }
 0x26b   :  { %1027 = vmatpush.msra.mxu1 %v1900_v18 }
 0x26d   :  { %1028 = vmatpush.msra.mxu1 %v1899_v20 }
 0x26f   :  { %1844 = vmatmul.msk.f32.gmra.mxu2 %vm487_vm1, %v468_v56  ;;  %846 = vmatmul.f32.vlgmr.msra.gmra.mxu3 %v2139_v46 }
 0x270   :  { %662 = vmatmul.f32.gmra.mxu0 %v2139_v46  ;;  %1882 = vmatmul.msk.f32.gmra.mxu1 %vm487_vm1, %v468_v56 }
 0x2af   :  { %v642_v22 = vpop.f32.mrf.mxu0 }
 0x2b5   :  { %v683_v23 = vpop.f32.mrf.mxu1 }
 0x2b6   :  { %v684_v24 = vadd.f32 %v683_v23, %v642_v22 }
 0x2b8   :  { %v707_v26 = vadd.f32 %v2923_v21, %v684_v24 }
 0x2ba   :  { %v723_v27 = vmax.f32 %v707_v26, 0.0  ;;  %v529_v28 = vpop.f32.mrf.mxu2  ;;  %v575_v32 = vpop.f32.mrf.mxu3 }
 0x2bb   :  { %v573_v29 = vadd.f32 %v572_v25, %v529_v28 }
 0x2bc   :  { %964 = vmatmul.f32.vlgmr.msra.gmra.mxu0 %v723_v27 }
 0x2bd   :  { %v599_v30 = vadd.f32 %v2923_v21, %v573_v29  ;;  %v645_v35 = vpop.f32.mrf.mxu0  ;;  %v686_v36 = vpop.f32.mrf.mxu1 }
 0x2be   :  { %v687_v39 = vadd.f32 %v686_v36, %v645_v35 }
 0x2bf   :  { %v715_v31 = vmax.f32 %v599_v30, 0.0 }
 0x2c0   :  { %v708_v40 = vadd.f32 %v2923_v21, %v687_v39 }
 0x2c1   :  { %781 = vmatmul.f32.vlgmr.msra.gmra.mxu2 %v715_v31  ;;  %849 = vmatmul.f32.gmra.mxu3 %v715_v31 }
 0x2c2   :  { %1029 = vmatmul.f32.vlgmr.msra.gmra.mxu1 %v715_v31  ;;  %v532_v33 = vpop.f32.mrf.mxu2  ;;  %v578_v42 = vpop.f32.mrf.mxu3  ;;  %v724_v44 = vmax.f32 %v708_v40, 0.0 }
 0x2c3   :  { %v576_v34 = vadd.f32 %v575_v32, %v532_v33 }
 0x2c5   :  { %v600_v37 = vadd.f32 %v2923_v21, %v576_v34  ;;  %v648_v48 = vpop.f32.mrf.mxu0  ;;  %v689_v49 = vpop.f32.mrf.mxu1 }
 0x2c6   :  { %v690_v50 = vadd.f32 %v689_v49, %v648_v48 }
 0x2c7   :  { %v716_v38 = vmax.f32 %v600_v37, 0.0 }
 0x2c8   :  { %v709_v52 = vadd.f32 %v2923_v21, %v690_v50 }
 0x2c9   :  { %784 = vmatmul.f32.gmra.mxu2 %v723_v27  ;;  %852 = vmatmul.f32.gmra.mxu3 %v723_v27 }
 0x2ca   :  { %967 = vmatmul.f32.gmra.mxu0 %v716_v38  ;;  %1032 = vmatmul.f32.gmra.mxu1 %v723_v27  ;;  %v535_v41 = vpop.f32.mrf.mxu2  ;;  %v581_v54 = vpop.f32.mrf.mxu3  ;;  %v725_v55 = vmax.f32 %v709_v52, 0.0 }
 0x2cb   :  { %v579_v45 = vadd.f32 %v578_v42, %v535_v41  ;;  %v2945_v41 = vld [vmem:[%s3448_s12] ss:$0 sm:$0xff] }
 0x2cd   :  { %v601_v47 = vadd.f32 %v2923_v21, %v579_v45  ;;  %v651_v57 = vpop.f32.mrf.mxu0  ;;  %v692_v58 = vpop.f32.mrf.mxu1 }
 0x2ce   :  { %v693_v59 = vadd.f32 %v692_v58, %v651_v57 }
 0x2cf   :  { %v717_v51 = vmax.f32 %v601_v47, 0.0 }
 0x2d0   :  { %v710_v61 = vadd.f32 %v2923_v21, %v693_v59 }
 0x2d1   :  { %787 = vmatmul.f32.gmra.mxu2 %v716_v38  ;;  %855 = vmatmul.f32.gmra.mxu3 %v716_v38 }
 0x2d2   :  { %970 = vmatmul.f32.gmra.mxu0 %v724_v44  ;;  %1035 = vmatmul.f32.gmra.mxu1 %v716_v38  ;;  %v538_v53 = vpop.f32.mrf.mxu2  ;;  %v584_v63 = vpop.f32.mrf.mxu3  ;;  %v726_v0 = vmax.f32 %v710_v61, 0.0 }
 0x2d3   :  { %v582_v43 = vadd.f32 %v581_v54, %v538_v53 }
 0x2d5   :  { %v602_v56 = vadd.f32 %v2923_v21, %v582_v43  ;;  %v654_v3 = vpop.f32.mrf.mxu0  ;;  %v695_v4 = vpop.f32.mrf.mxu1 }
 0x2d6   :  { %v696_v5 = vadd.f32 %v695_v4, %v654_v3 }
 0x2d7   :  { %v718_v60 = vmax.f32 %v602_v56, 0.0 }
 0x2d8   :  { %v711_v7 = vadd.f32 %v2923_v21, %v696_v5 }
 0x2d9   :  { %790 = vmatmul.f32.gmra.mxu2 %v724_v44  ;;  %858 = vmatmul.f32.gmra.mxu3 %v724_v44 }
 0x2da   :  { %973 = vmatmul.f32.gmra.mxu0 %v717_v51  ;;  %1038 = vmatmul.f32.gmra.mxu1 %v724_v44  ;;  %v541_v62 = vpop.f32.mrf.mxu2  ;;  %v587_v9 = vpop.f32.mrf.mxu3  ;;  %v727_v10 = vmax.f32 %v711_v7, 0.0 }
 0x2db   :  { %v585_v1 = vadd.f32 %v584_v63, %v541_v62 }
 0x2dd   :  { %v603_v2 = vadd.f32 %v2923_v21, %v585_v1  ;;  %v657_v13 = vpop.f32.mrf.mxu0  ;;  %v698_v14 = vpop.f32.mrf.mxu1 }
 0x2de   :  { %v699_v15 = vadd.f32 %v698_v14, %v657_v13 }
 0x2df   :  { %v719_v6 = vmax.f32 %v603_v2, 0.0 }
 0x2e0   :  { %v712_v17 = vadd.f32 %v2923_v21, %v699_v15 }
 0x2e1   :  { %793 = vmatmul.f32.gmra.mxu2 %v717_v51  ;;  %861 = vmatmul.f32.gmra.mxu3 %v717_v51 }
 0x2e2   :  { %976 = vmatmul.f32.gmra.mxu0 %v725_v55  ;;  %1041 = vmatmul.f32.gmra.mxu1 %v717_v51  ;;  %v544_v8 = vpop.f32.mrf.mxu2  ;;  %v590_v19 = vpop.f32.mrf.mxu3  ;;  %v728_v20 = vmax.f32 %v712_v17, 0.0 }
 0x2e3   :  { %v588_v11 = vadd.f32 %v587_v9, %v544_v8 }
 0x2e5   :  { %v604_v12 = vadd.f32 %v2923_v21, %v588_v11  ;;  %v660_v24 = vpop.f32.mrf.mxu0  ;;  %v701_v25 = vpop.f32.mrf.mxu1 }
 0x2e6   :  { %v702_v26 = vadd.f32 %v701_v25, %v660_v24 }
 0x2e7   :  { %v720_v16 = vmax.f32 %v604_v12, 0.0 }
 0x2e8   :  { %v713_v28 = vadd.f32 %v2923_v21, %v702_v26 }
 0x2e9   :  { %796 = vmatmul.f32.gmra.mxu2 %v725_v55  ;;  %864 = vmatmul.f32.gmra.mxu3 %v725_v55 }
 0x2ea   :  { %979 = vmatmul.f32.gmra.mxu0 %v718_v60  ;;  %1044 = vmatmul.f32.gmra.mxu1 %v725_v55  ;;  %v547_v18 = vpop.f32.mrf.mxu2  ;;  %v593_v30 = vpop.f32.mrf.mxu3  ;;  %v729_v31 = vmax.f32 %v713_v28, 0.0 }
 0x2eb   :  { %v591_v22 = vadd.f32 %v590_v19, %v547_v18 }
 0x2ed   :  { %v605_v23 = vadd.f32 %v2923_v21, %v591_v22  ;;  %v663_v34 = vpop.f32.mrf.mxu0  ;;  %v704_v35 = vpop.f32.mrf.mxu1 }
 0x2ee   :  { %v705_v36 = vadd.f32 %v704_v35, %v663_v34 }
 0x2ef   :  { %v721_v27 = vmax.f32 %v605_v23, 0.0 }
 0x2f0   :  { %v714_v38 = vadd.f32 %v2923_v21, %v705_v36 }
 0x2f1   :  { %799 = vmatmul.f32.gmra.mxu2 %v718_v60  ;;  %867 = vmatmul.f32.gmra.mxu3 %v718_v60 }
 0x2f2   :  { %982 = vmatmul.f32.gmra.mxu0 %v726_v0  ;;  %1047 = vmatmul.f32.gmra.mxu1 %v718_v60  ;;  %v550_v29 = vpop.f32.mrf.mxu2  ;;  %v730_v39 = vmax.f32 %v714_v38, 0.0  ;;  %v847_v40 = vpop.f32.mrf.mxu3 }
 0x2f3   :  { %v594_v32 = vadd.f32 %v593_v30, %v550_v29 }
 0x2f5   :  { %v606_v33 = vadd.f32 %v2923_v21, %v594_v32 }
 0x2f7   :  { %v722_v37 = vmax.f32 %v606_v33, 0.0 }
 0x2f9   :  { %802 = vmatmul.f32.gmra.mxu2 %v726_v0  ;;  %870 = vmatmul.f32.gmra.mxu3 %v726_v0 }
 0x2fa   :  { %985 = vmatmul.f32.gmra.mxu0 %v719_v6  ;;  %1050 = vmatmul.f32.gmra.mxu1 %v726_v0 }
 0x301   :  { %805 = vmatmul.f32.gmra.mxu2 %v719_v6  ;;  %873 = vmatmul.f32.gmra.mxu3 %v719_v6 }
 0x302   :  { %988 = vmatmul.f32.gmra.mxu0 %v727_v10  ;;  %1053 = vmatmul.f32.gmra.mxu1 %v719_v6 }
 0x309   :  { %808 = vmatmul.f32.gmra.mxu2 %v727_v10  ;;  %876 = vmatmul.f32.gmra.mxu3 %v727_v10 }
 0x30a   :  { %991 = vmatmul.f32.gmra.mxu0 %v720_v16  ;;  %1056 = vmatmul.f32.gmra.mxu1 %v727_v10 }
 0x311   :  { %811 = vmatmul.f32.gmra.mxu2 %v720_v16  ;;  %879 = vmatmul.f32.gmra.mxu3 %v720_v16 }
 0x312   :  { %994 = vmatmul.f32.gmra.mxu0 %v728_v20  ;;  %1059 = vmatmul.f32.gmra.mxu1 %v720_v16 }
 0x319   :  { %814 = vmatmul.f32.gmra.mxu2 %v728_v20  ;;  %882 = vmatmul.f32.gmra.mxu3 %v728_v20 }
 0x31a   :  { %997 = vmatmul.f32.gmra.mxu0 %v721_v27  ;;  %1062 = vmatmul.f32.gmra.mxu1 %v728_v20 }
 0x321   :  { %817 = vmatmul.f32.gmra.mxu2 %v721_v27  ;;  %885 = vmatmul.f32.gmra.mxu3 %v721_v27 }
 0x322   :  { %1000 = vmatmul.f32.gmra.mxu0 %v729_v31  ;;  %1065 = vmatmul.f32.gmra.mxu1 %v721_v27 }
 0x329   :  { %820 = vmatmul.f32.gmra.mxu2 %v729_v31  ;;  %888 = vmatmul.f32.gmra.mxu3 %v729_v31 }
 0x32a   :  { %1003 = vmatmul.f32.gmra.mxu0 %v722_v37  ;;  %1068 = vmatmul.f32.gmra.mxu1 %v729_v31 }
 0x331   :  { %823 = vmatmul.f32.gmra.mxu2 %v722_v37  ;;  %891 = vmatmul.f32.gmra.mxu3 %v722_v37 }
 0x332   :  { %1006 = vmatmul.f32.gmra.mxu0 %v730_v39  ;;  %1071 = vmatmul.f32.gmra.mxu1 %v722_v37 }
 0x339   :  { %826 = vmatmul.f32.gmra.mxu2 %v730_v39  ;;  %v965_v42 = vpop.f32.mrf.mxu0 }
 0x33a   :  { %1009 = vmatmul.f32.gmra.mxu0 %v2139_v46  ;;  %1074 = vmatmul.f32.gmra.mxu1 %v730_v39 }
 0x33f   :  { %v1030_v44 = vpop.f32.mrf.mxu1 }
 0x340   :  { %v1031_v45 = vadd.f32 %v1030_v44, %v965_v42 }
 0x342   :  { %v1078_v21 = vadd.f32 %v2945_v41, %v1031_v45 }
 0x344   :  { %v1947_v47 = vmul.f32 -1.442695, %v1078_v21  ;;  %v782_v48 = vpop.f32.mrf.mxu2  ;;  %v850_v49 = vpop.f32.mrf.mxu3 }
 0x345   :  { %v848_v50 = vadd.f32 %v847_v40, %v782_v48 }
 0x346   :  { %1984 = vpow2.f32 %v1947_v47 }
 0x347   :  { %v898_v51 = vadd.f32 %v2945_v41, %v848_v50  ;;  %v968_v46 = vpop.f32.mrf.mxu0  ;;  %v1033_v52 = vpop.f32.mrf.mxu1 }
 0x348   :  { %v1034_v53 = vadd.f32 %v1033_v52, %v968_v46 }
 0x349   :  { %v1931_v54 = vmul.f32 -1.442695, %v898_v51 }
 0x34a   :  { %v1079_v55 = vadd.f32 %v2945_v41, %v1034_v53 }
 0x34b   :  { %1986 = vpow2.f32 %v1931_v54 }
 0x34c   :  { %v1985_v43 = vpop.eup %1984  ;;  %v1948_v56 = vmul.f32 -1.442695, %v1079_v55  ;;  %v785_v57 = vpop.f32.mrf.mxu2 }
 0x34d   :  { %v853_v58 = vpop.f32.mrf.mxu3  ;;  %v1446_v59 = vadd.f32 1.0, %v1985_v43  ;;  %v851_v60 = vadd.f32 %v850_v49, %v785_v57 }
 0x34e   :  { %1988 = vpow2.f32 %v1948_v56 }
 0x34f   :  { %1990 = vrcp.f32 %v1446_v59  ;;  %v971_v61 = vpop.f32.mrf.mxu0  ;;  %v1036_v62 = vpop.f32.mrf.mxu1  ;;  %v899_v63 = vadd.f32 %v2945_v41, %v851_v60  ;;  %v1471_v13 = vand.u32 2147483647, %v1446_v59  ;;  %v1473_v19 = vand.u32 2147483648, %v1446_v59 }
 0x350   :  { %v1037_v0 = vadd.f32 %v1036_v62, %v971_v61  ;;  %vm1467_vm3 = vweird.f32 %v1446_v59 }
 0x351   :  { %v1987_v1 = vpop.eup %1986  ;;  %v1932_v3 = vmul.f32 -1.442695, %v899_v63  ;;  %vm2960_vm4 = vcmp.eq.f32.partialorder %v1471_v13, 8.507059e+37  ;;  %v1474_v34 = vor.u32 1.1754944e-38, %v1473_v19 }
 0x352   :  { %v2951_v2 = vadd.f32 1.0, %v1987_v1  ;;  %v1080_v4 = vadd.f32 %v2945_v41, %v1037_v0 }
 0x354   :  { %v1989_v5 = vpop.eup %1988  ;;  %1992 = vrcp.f32 %v2951_v2  ;;  %v788_v6 = vpop.f32.mrf.mxu2  ;;  %v1949_v10 = vmul.f32 -1.442695, %v1080_v4  ;;  %vm1163_vm6 = vweird.f32 %v2951_v2  ;;  %v1169_v39 = vand.u32 2147483648, %v2951_v2 }
 0x355   :  { %v856_v7 = vpop.f32.mrf.mxu3  ;;  %v1991_v8 = vpop.eup %1990  ;;  %v2955_v9 = vadd.f32 1.0, %v1989_v5  ;;  %1994 = vpow2.f32 %v1932_v3  ;;  %v854_v11 = vadd.f32 %v853_v58, %v788_v6  ;;  %v1167_v45 = vand.u32 2147483647, %v2951_v2 }
 0x356   :  { %v1463_v12 = vmul.f32 %v1991_v8, %v1446_v59  ;;  %vm1468_vm2 = vweird.f32 %v1991_v8  ;;  %v1170_v55 = vor.u32 1.1754944e-38, %v1169_v39 }
 0x357   :  { %1996 = vrcp.f32 %v2955_v9  ;;  %v974_v14 = vpop.f32.mrf.mxu0  ;;  %v1039_v15 = vpop.f32.mrf.mxu1  ;;  %v900_v17 = vadd.f32 %v2945_v41, %v854_v11  ;;  %vm1469_vm5 = vmor %vm1467_vm3, %vm1468_vm2  ;;  %v1486_v49 = vand.u32 2147483647, %v2955_v9  ;;  %v1488_v46 = vand.u32 2147483648, %v2955_v9 }
 0x358   :  { %v1464_v16 = vsub.f32 1.0, %v1463_v12  ;;  %1998 = vpow2.f32 %v1949_v10  ;;  %v1040_v18 = vadd.f32 %v1039_v15, %v974_v14  ;;  %vm1168_vm10 = vcmp.eq.f32.partialorder %v1167_v45, 8.507059e+37 }
 0x359   :  { %v1933_v23 = vmul.f32 -1.442695, %v900_v17  ;;  %vm1482_vm11 = vweird.f32 %v2955_v9  ;;  %vm1487_vm13 = vcmp.eq.f32.partialorder %v1486_v49, 8.507059e+37  ;;  %v1489_v1 = vor.u32 1.1754944e-38, %v1488_v46 }
 0x35a   :  { %v1993_v20 = vpop.eup %1992  ;;  %v1465_v22 = vmul.f32 %v1991_v8, %v1464_v16  ;;  %v1081_v24 = vadd.f32 %v2945_v41, %v1040_v18 }
 0x35b   :  { %v1995_v25 = vpop.eup %1994  ;;  %v1159_v27 = vmul.f32 %v1993_v20, %v2951_v2  ;;  %2000 = vpow2.f32 %v1933_v23  ;;  %vm1164_vm7 = vweird.f32 %v1993_v20 }
 0x35c   :  { %v1466_v28 = vadd.f32 %v1991_v8, %v1465_v22  ;;  %v2965_v29 = vadd.f32 1.0, %v1995_v25  ;;  %v1950_v30 = vmul.f32 -1.442695, %v1081_v24  ;;  %v791_v31 = vpop.f32.mrf.mxu2  ;;  %vm1165_vm8 = vmor %vm1163_vm6, %vm1164_vm7 }
 0x35d   :  { %v2967_v32 = vpop.f32.mrf.mxu3  ;;  %v1997_v33 = vpop.eup %1996  ;;  %v1160_v35 = vsub.f32 1.0, %v1159_v27  ;;  %v857_v36 = vadd.f32 %v856_v7, %v791_v31 }
 0x35e   :  { %v1999_v37 = vpop.eup %1998  ;;  %v1470_v38 = vsel %vm1469_vm5, %v1991_v8, %v1466_v28  ;;  %v1478_v40 = vmul.f32 %v1997_v33, %v2955_v9  ;;  %2002 = vrcp.f32 %v2965_v29  ;;  %vm1483_vm9 = vweird.f32 %v1997_v33 }
 0x35f   :  { %v1475_v42 = vsel %vm2960_vm4, %v1474_v34, %v1470_v38  ;;  %v1161_v44 = vmul.f32 %v1993_v20, %v1160_v35  ;;  %v977_v21 = vpop.f32.mrf.mxu0  ;;  %v1042_v47 = vpop.f32.mrf.mxu1  ;;  %v2978_v50 = vadd.f32 1.0, %v1999_v37  ;;  %2004 = vpow2.f32 %v1950_v30  ;;  %vm1484_vm12 = vmor %vm1482_vm11, %vm1483_vm9 }
 0x360   :  { %1703 = vst.msk [vmem:[#allocation2 + $0x8] sm:$0xff] %vm308_vm0, %v1475_v42  ;;  %v1479_v48 = vsub.f32 1.0, %v1478_v40  ;;  %v901_v52 = vadd.f32 %v2945_v41, %v857_v36  ;;  %v1043_v53 = vadd.f32 %v1042_v47, %v977_v21  ;;  %v1182_v3 = vand.u32 2147483647, %v2965_v29 }
 0x361   :  { %v1162_v51 = vadd.f32 %v1993_v20, %v1161_v44  ;;  %v2001_v54 = vpop.eup %2000  ;;  %2006 = vrcp.f32 %v2978_v50  ;;  %v1184_v6 = vand.u32 2147483648, %v2965_v29  ;;  %v1501_v7 = vand.u32 2147483647, %v2978_v50 }
 0x362   :  { %v1480_v43 = vmul.f32 %v1997_v33, %v1479_v48  ;;  %v2986_v57 = vadd.f32 1.0, %v2001_v54  ;;  %v1934_v61 = vmul.f32 -1.442695, %v901_v52  ;;  %v1082_v62 = vadd.f32 %v2945_v41, %v1043_v53 }
 0x363   :  { %v1166_v56 = vsel %vm1165_vm8, %v1993_v20, %v1162_v51  ;;  %vm1178_vm14 = vweird.f32 %v2965_v29  ;;  %v1503_v14 = vand.u32 2147483648, %v2978_v50  ;;  %vm3001_vm1 = vcmp.eq.f32.partialorder %v1182_v3, 8.507059e+37 }
 0x364   :  { %v2003_v58 = vpop.eup %2002  ;;  %v1171_v59 = vsel %vm1168_vm10, %v1170_v55, %v1166_v56  ;;  %v1481_v60 = vadd.f32 %v1997_v33, %v1480_v43  ;;  %v794_v63 = vpop.f32.mrf.mxu2  ;;  %2008 = vrcp.f32 %v2986_v57  ;;  %v1951_v15 = vmul.f32 -1.442695, %v1082_v62 }
 0x365   :  { %v862_v0 = vpop.f32.mrf.mxu3  ;;  %1702 = vst.msk [vmem:[#allocation2] sm:$0xff] %vm308_vm0, %v1171_v59  ;;  %v1174_v2 = vmul.f32 %v2003_v58, %v2965_v29  ;;  %v2005_v4 = vpop.eup %2004  ;;  %2010 = vpow2.f32 %v1934_v61  ;;  %v860_v16 = vadd.f32 %v2967_v32, %v794_v63  ;;  %vm1179_vm15 = vweird.f32 %v2003_v58 }
 0x366   :  { %v1485_v5 = vsel %vm1484_vm12, %v1997_v33, %v1481_v60  ;;  %v2996_v10 = vadd.f32 1.0, %v2005_v4  ;;  %v1185_v20 = vor.u32 1.1754944e-38, %v1184_v6  ;;  %vm1497_vm2 = vweird.f32 %v2978_v50  ;;  %vm1180_vm4 = vmor %vm1178_vm14, %vm1179_vm15 }
 0x367   :  { %v1490_v8 = vsel %vm1487_vm13, %v1489_v1, %v1485_v5  ;;  %v1175_v9 = vsub.f32 1.0, %v1174_v2  ;;  %v980_v11 = vpop.f32.mrf.mxu0  ;;  %v1045_v12 = vpop.f32.mrf.mxu1  ;;  %vm3007_vm3 = vcmp.eq.f32.partialorder %v1501_v7, 8.507059e+37  ;;  %v902_v25 = vadd.f32 %v2945_v41, %v860_v16 }
 0x368   :  { %v2007_v13 = vpop.eup %2006  ;;  %1705 = vst.msk [vmem:[#allocation2 + $0x18] sm:$0xff] %vm308_vm0, %v1490_v8  ;;  %2012 = vrcp.f32 %v2996_v10  ;;  %v1504_v27 = vor.u32 1.1754944e-38, %v1503_v14  ;;  %vm1193_vm5 = vweird.f32 %v2986_v57  ;;  %v1197_v28 = vand.u32 2147483647, %v2986_v57 }
 0x369   :  { %v1176_v17 = vmul.f32 %v2003_v58, %v1175_v9  ;;  %v1493_v19 = vmul.f32 %v2007_v13, %v2978_v50  ;;  %2014 = vpow2.f32 %v1951_v15  ;;  %v1046_v30 = vadd.f32 %v1045_v12, %v980_v11 }
 0x36a   :  { %v2009_v26 = vpop.eup %2008  ;;  %vm1498_vm6 = vweird.f32 %v2007_v13  ;;  %v1935_v29 = vmul.f32 -1.442695, %v902_v25  ;;  %v1199_v44 = vand.u32 2147483648, %v2986_v57  ;;  %vm3034_vm9 = vcmp.eq.f32.partialorder %v1197_v28, 8.507059e+37 }
 0x36b   :  { %v1177_v23 = vadd.f32 %v2003_v58, %v1176_v17  ;;  %v1494_v24 = vsub.f32 1.0, %v1493_v19  ;;  %v1189_v35 = vmul.f32 %v2009_v26, %v2986_v57  ;;  %v2011_v36 = vpop.eup %2010  ;;  %v1083_v38 = vadd.f32 %v2945_v41, %v1046_v30  ;;  %vm1499_vm7 = vmor %vm1497_vm2, %vm1498_vm6 }
 0x36c   :  { %v797_v31 = vpop.f32.mrf.mxu2  ;;  %v3025_v45 = vadd.f32 1.0, %v2011_v36  ;;  %2016 = vpow2.f32 %v1935_v29  ;;  %vm1194_vm8 = vweird.f32 %v2009_v26  ;;  %v1516_v50 = vand.u32 2147483647, %v2996_v10 }
 0x36d   :  { %v3017_v32 = vpop.f32.mrf.mxu3  ;;  %v1181_v33 = vsel %vm1180_vm4, %v2003_v58, %v1177_v23  ;;  %v1495_v34 = vmul.f32 %v2007_v13, %v1494_v24  ;;  %v863_v39 = vadd.f32 %v862_v0, %v797_v31  ;;  %v1190_v42 = vsub.f32 1.0, %v1189_v35  ;;  %vm1195_vm10 = vmor %vm1193_vm5, %vm1194_vm8 }
 0x36e   :  { %v1186_v37 = vsel %vm3001_vm1, %v1185_v20, %v1181_v33  ;;  %v2013_v48 = vpop.eup %2012  ;;  %v1952_v49 = vmul.f32 -1.442695, %v1083_v38  ;;  %2018 = vrcp.f32 %v3025_v45  ;;  %v1200_v59 = vor.u32 1.1754944e-38, %v1199_v44 }
 0x36f   :  { %1704 = vst.msk [vmem:[#allocation2 + $0x10] sm:$0xff] %vm308_vm0, %v1186_v37  ;;  %v1496_v40 = vadd.f32 %v2007_v13, %v1495_v34  ;;  %v983_v21 = vpop.f32.mrf.mxu0  ;;  %v1048_v47 = vpop.f32.mrf.mxu1  ;;  %v903_v51 = vadd.f32 %v2945_v41, %v863_v39  ;;  %v1191_v54 = vmul.f32 %v2009_v26, %v1190_v42  ;;  %v1508_v55 = vmul.f32 %v2013_v48, %v2996_v10 }
 0x370   :  { %v1049_v46 = vadd.f32 %v1048_v47, %v983_v21  ;;  %v2015_v52 = vpop.eup %2014  ;;  %v1518_v62 = vand.u32 2147483648, %v2996_v10  ;;  %2020 = vpow2.f32 %v1952_v49  ;;  %vm1513_vm11 = vweird.f32 %v2013_v48 }
 0x371   :  { %v1500_v53 = vsel %vm1499_vm7, %v2007_v13, %v1496_v40  ;;  %v1192_v58 = vadd.f32 %v2009_v26, %v1191_v54  ;;  %v1509_v60 = vsub.f32 1.0, %v1508_v55  ;;  %v3041_v61 = vadd.f32 1.0, %v2015_v52 }
 0x372   :  { %v1505_v43 = vsel %vm3007_vm3, %v1504_v27, %v1500_v53  ;;  %v1936_v63 = vmul.f32 -1.442695, %v903_v51  ;;  %v1084_v0 = vadd.f32 %v2945_v41, %v1049_v46  ;;  %v2017_v5 = vpop.eup %2016  ;;  %vm1512_vm12 = vweird.f32 %v2996_v10 }
 0x373   :  { %1707 = vst.msk [vmem:[#allocation2 + $0x28] sm:$0xff] %vm308_vm0, %v1505_v43  ;;  %v1196_v3 = vsel %vm1195_vm10, %v2009_v26, %v1192_v58  ;;  %v1510_v4 = vmul.f32 %v2013_v48, %v1509_v60  ;;  %2022 = vrcp.f32 %v3041_v61  ;;  %vm3053_vm13 = vcmp.eq.f32.partialorder %v1516_v50, 8.507059e+37  ;;  %vm1514_vm14 = vmor %vm1512_vm12, %vm1513_vm11 }
 0x374   :  { %v800_v1 = vpop.f32.mrf.mxu2  ;;  %v1201_v6 = vsel %vm3034_vm9, %v1200_v59, %v1196_v3  ;;  %v3058_v8 = vadd.f32 1.0, %v2017_v5  ;;  %2024 = vpow2.f32 %v1936_v63  ;;  %v1953_v9 = vmul.f32 -1.442695, %v1084_v0  ;;  %v2019_v13 = vpop.eup %2018 }
 0x375   :  { %v3047_v2 = vpop.f32.mrf.mxu3  ;;  %1706 = vst.msk [vmem:[#allocation2 + $0x20] sm:$0xff] %vm308_vm0, %v1201_v6  ;;  %v1511_v7 = vadd.f32 %v2013_v48, %v1510_v4  ;;  %v1519_v14 = vor.u32 1.1754944e-38, %v1518_v62  ;;  %v1212_v15 = vand.u32 2147483647, %v3025_v45  ;;  %v1214_v10 = vand.u32 2147483648, %v3025_v45 }
 0x376   :  { %v866_v16 = vadd.f32 %v3017_v32, %v800_v1  ;;  %v1204_v18 = vmul.f32 %v2019_v13, %v3025_v45  ;;  %vm1208_vm15 = vweird.f32 %v3025_v45  ;;  %2026 = vrcp.f32 %v3058_v8  ;;  %v2021_v19 = vpop.eup %2020 }
 0x377   :  { %v986_v11 = vpop.f32.mrf.mxu0  ;;  %v1051_v12 = vpop.f32.mrf.mxu1  ;;  %v1515_v17 = vsel %vm1514_vm14, %v2013_v48, %v1511_v7  ;;  %v1531_v22 = vand.u32 2147483647, %v3041_v61  ;;  %v1533_v23 = vand.u32 2147483648, %v3041_v61  ;;  %v3071_v27 = vadd.f32 1.0, %v2021_v19 }
 0x378   :  { %v1520_v20 = vsel %vm3053_vm13, %v1519_v14, %v1515_v17  ;;  %v1052_v24 = vadd.f32 %v1051_v12, %v986_v11  ;;  %v1205_v26 = vsub.f32 1.0, %v1204_v18  ;;  %2028 = vpow2.f32 %v1953_v9 }
 0x379   :  { %v2023_v25 = vpop.eup %2022  ;;  %1709 = vst.msk [vmem:[#allocation2 + $0x38] sm:$0xff] %vm308_vm0, %v1520_v20  ;;  %v904_v28 = vadd.f32 %v2945_v41, %v866_v16  ;;  %vm3074_vm1 = vcmp.eq.f32.partialorder %v1212_v15, 8.507059e+37  ;;  %v1215_v31 = vor.u32 1.1754944e-38, %v1214_v10  ;;  %vm1527_vm2 = vweird.f32 %v3041_v61 }
 0x37a   :  { %v1523_v32 = vmul.f32 %v2023_v25, %v3041_v61  ;;  %v2025_v35 = vpop.eup %2024  ;;  %v1206_v36 = vmul.f32 %v2019_v13, %v1205_v26  ;;  %vm1209_vm3 = vweird.f32 %v2019_v13  ;;  %v1227_v37 = vand.u32 2147483647, %v3058_v8 }
 0x37b   :  { %2030 = vrcp.f32 %v3071_v27  ;;  %vm3082_vm4 = vcmp.eq.f32.partialorder %v1531_v22, 8.507059e+37  ;;  %v1534_v39 = vor.u32 1.1754944e-38, %v1533_v23  ;;  %v3086_v40 = vadd.f32 1.0, %v2025_v35  ;;  %vm1210_vm6 = vmor %vm1208_vm15, %vm1209_vm3 }
 0x37c   :  { %v803_v33 = vpop.f32.mrf.mxu2  ;;  %v1524_v29 = vsub.f32 1.0, %v1523_v32  ;;  %v2027_v42 = vpop.eup %2026  ;;  %v1207_v44 = vadd.f32 %v2019_v13, %v1206_v36  ;;  %vm1223_vm5 = vweird.f32 %v3058_v8  ;;  %v1937_v21 = vmul.f32 -1.442695, %v904_v28 }
 0x37d   :  { %v871_v34 = vpop.f32.mrf.mxu3  ;;  %v1085_v47 = vadd.f32 %v2945_v41, %v1052_v24  ;;  %vm1528_vm7 = vweird.f32 %v2023_v25  ;;  %v1219_v46 = vmul.f32 %v2027_v42, %v3058_v8  ;;  %v1229_v52 = vand.u32 2147483648, %v3058_v8 }
 0x37e   :  { %v1525_v51 = vmul.f32 %v2023_v25, %v1524_v29  ;;  %v2029_v53 = vpop.eup %2028  ;;  %v1211_v54 = vsel %vm1210_vm6, %v2019_v13, %v1207_v44  ;;  %vm3094_vm8 = vcmp.eq.f32.partialorder %v1227_v37, 8.507059e+37  ;;  %v1546_v43 = vand.u32 2147483647, %v3071_v27  ;;  %vm1529_vm9 = vmor %vm1527_vm2, %vm1528_vm7 }
 0x37f   :  { %v989_v48 = vpop.f32.mrf.mxu0  ;;  %v1054_v49 = vpop.f32.mrf.mxu1  ;;  %2032 = vrcp.f32 %v3086_v40  ;;  %v1216_v45 = vsel %vm3074_vm1, %v1215_v31, %v1211_v54  ;;  %v1220_v50 = vsub.f32 1.0, %v1219_v46  ;;  %v1548_v58 = vand.u32 2147483648, %v3071_v27 }
 0x380   :  { %v1526_v56 = vadd.f32 %v2023_v25, %v1525_v51  ;;  %1708 = vst.msk [vmem:[#allocation2 + $0x30] sm:$0xff] %vm308_vm0, %v1216_v45  ;;  %v3106_v60 = vadd.f32 1.0, %v2029_v53  ;;  %2034 = vpow2.f32 %v1937_v21  ;;  %v1954_v62 = vmul.f32 -1.442695, %v1085_v47 }
 0x381   :  { %v2031_v59 = vpop.eup %2030  ;;  %v869_v63 = vadd.f32 %v3047_v2, %v803_v33  ;;  %v1221_v1 = vmul.f32 %v2027_v42, %v1220_v50  ;;  %vm1224_vm10 = vweird.f32 %v2027_v42  ;;  %v1230_v57 = vor.u32 1.1754944e-38, %v1229_v52 }
 0x382   :  { %v1530_v0 = vsel %vm1529_vm9, %v2023_v25, %v1526_v56  ;;  %v1538_v3 = vmul.f32 %v2031_v59, %v3071_v27  ;;  %vm1542_vm11 = vweird.f32 %v3071_v27  ;;  %2036 = vrcp.f32 %v3106_v60  ;;  %vm1225_vm13 = vmor %vm1223_vm5, %vm1224_vm10 }
 0x383   :  { %v1535_v6 = vsel %vm3082_vm4, %v1534_v39, %v1530_v0  ;;  %v1222_v61 = vadd.f32 %v2027_v42, %v1221_v1  ;;  %vm3117_vm12 = vcmp.eq.f32.partialorder %v1546_v43, 8.507059e+37  ;;  %v1549_v9 = vor.u32 1.1754944e-38, %v1548_v58 }
 0x384   :  { %v806_v4 = vpop.f32.mrf.mxu2  ;;  %1711 = vst.msk [vmem:[#allocation2 + $0x48] sm:$0xff] %vm308_vm0, %v1535_v6  ;;  %v1539_v2 = vsub.f32 1.0, %v1538_v3  ;;  %2038 = vpow2.f32 %v1954_v62  ;;  %v905_v12 = vadd.f32 %v2945_v41, %v869_v63  ;;  %v1055_v13 = vadd.f32 %v1054_v49, %v989_v48 }
 0x385   :  { %v3110_v5 = vpop.f32.mrf.mxu3  ;;  %v2033_v11 = vpop.eup %2032  ;;  %v872_v14 = vadd.f32 %v871_v34, %v806_v4  ;;  %v1226_v16 = vsel %vm1225_vm13, %v2027_v42, %v1222_v61  ;;  %vm1543_vm14 = vweird.f32 %v2031_v59  ;;  %vm1238_vm15 = vweird.f32 %v3086_v40 }
 0x386   :  { %v1540_v17 = vmul.f32 %v2031_v59, %v1539_v2  ;;  %v1234_v18 = vmul.f32 %v2033_v11, %v3086_v40  ;;  %v2035_v19 = vpop.eup %2034  ;;  %v1231_v20 = vsel %vm3094_vm8, %v1230_v57, %v1226_v16  ;;  %v1242_v8 = vand.u32 2147483647, %v3086_v40  ;;  %vm1544_vm1 = vmor %vm1542_vm11, %vm1543_vm14 }
 0x387   :  { %v992_v15 = vpop.f32.mrf.mxu0  ;;  %v1057_v10 = vpop.f32.mrf.mxu1  ;;  %v1938_v22 = vmul.f32 -1.442695, %v905_v12  ;;  %1710 = vst.msk [vmem:[#allocation2 + $0x40] sm:$0xff] %vm308_vm0, %v1231_v20  ;;  %v1244_v25 = vand.u32 2147483648, %v3086_v40  ;;  %v3131_v26 = vadd.f32 1.0, %v2035_v19  ;;  %v1086_v30 = vadd.f32 %v2945_v41, %v1055_v13 }
 0x388   :  { %v1541_v23 = vadd.f32 %v2031_v59, %v1540_v17  ;;  %v1235_v24 = vsub.f32 1.0, %v1234_v18  ;;  %v2037_v28 = vpop.eup %2036  ;;  %v906_v31 = vadd.f32 %v2945_v41, %v872_v14  ;;  %v1058_v32 = vadd.f32 %v1057_v10, %v992_v15 }
 0x389   :  { %2040 = vpow2.f32 %v1938_v22  ;;  %vm1239_vm2 = vweird.f32 %v2033_v11  ;;  %v1553_v35 = vmul.f32 %v2037_v28, %v3106_v60  ;;  %vm3140_vm3 = vcmp.eq.f32.partialorder %v1242_v8, 8.507059e+37 }
 0x38a   :  { %v1545_v33 = vsel %vm1544_vm1, %v2031_v59, %v1541_v23  ;;  %v1236_v34 = vmul.f32 %v2033_v11, %v1235_v24  ;;  %v2039_v37 = vpop.eup %2038  ;;  %v1563_v27 = vand.u32 2147483648, %v3106_v60  ;;  %2042 = vrcp.f32 %v3131_v26  ;;  %vm1240_vm4 = vmor %vm1238_vm15, %vm1239_vm2 }
 0x38b   :  { %v1550_v29 = vsel %vm3117_vm12, %v1549_v9, %v1545_v33  ;;  %v1245_v42 = vor.u32 1.1754944e-38, %v1244_v25  ;;  %v1554_v44 = vsub.f32 1.0, %v1553_v35  ;;  %v3147_v21 = vadd.f32 1.0, %v2039_v37 }
 0x38c   :  { %v809_v36 = vpop.f32.mrf.mxu2  ;;  %1713 = vst.msk [vmem:[#allocation2 + $0x58] sm:$0xff] %vm308_vm0, %v1550_v29  ;;  %v1237_v39 = vadd.f32 %v2033_v11, %v1236_v34  ;;  %v1561_v48 = vand.u32 2147483647, %v3106_v60  ;;  %v1955_v49 = vmul.f32 -1.442695, %v1086_v30  ;;  %v1087_v46 = vadd.f32 %v2945_v41, %v1058_v32 }
 0x38d   :  { %v3149_v47 = vpop.f32.mrf.mxu3  ;;  %v1939_v51 = vmul.f32 -1.442695, %v906_v31  ;;  %v1555_v55 = vmul.f32 %v2037_v28, %v1554_v44  ;;  %vm1558_vm5 = vweird.f32 %v2037_v28  ;;  %2044 = vrcp.f32 %v3147_v21 }
 0x38e   :  { %v1241_v54 = vsel %vm1240_vm4, %v2033_v11, %v1237_v39  ;;  %vm1557_vm6 = vweird.f32 %v3106_v60  ;;  %v1564_v40 = vor.u32 1.1754944e-38, %v1563_v27  ;;  %2046 = vpow2.f32 %v1955_v49 }
 0x38f   :  { %v995_v52 = vpop.f32.mrf.mxu0  ;;  %v1060_v53 = vpop.f32.mrf.mxu1  ;;  %v1246_v45 = vsel %vm3140_vm3, %v1245_v42, %v1241_v54  ;;  %v1556_v56 = vadd.f32 %v2037_v28, %v1555_v55  ;;  %v1956_v58 = vmul.f32 -1.442695, %v1087_v46  ;;  %vm1559_vm7 = vmor %vm1557_vm6, %vm1558_vm5  ;;  %v1257_v62 = vand.u32 2147483647, %v3131_v26 }
 0x390   :  { %v2041_v43 = vpop.eup %2040  ;;  %1712 = vst.msk [vmem:[#allocation2 + $0x50] sm:$0xff] %vm308_vm0, %v1246_v45  ;;  %v1259_v63 = vand.u32 2147483648, %v3131_v26  ;;  %2048 = vpow2.f32 %v1939_v51  ;;  %v875_v0 = vadd.f32 %v3110_v5, %v809_v36  ;;  %vm1562_vm8 = vcmp.eq.f32.partialorder %v1561_v48, 8.507059e+37 }
 0x391   :  { %v3160_v50 = vadd.f32 1.0, %v2041_v43  ;;  %v2043_v59 = vpop.eup %2042  ;;  %v1560_v1 = vsel %vm1559_vm7, %v2037_v28, %v1556_v56  ;;  %vm1253_vm9 = vweird.f32 %v3131_v26  ;;  %v1576_v6 = vand.u32 2147483647, %v3147_v21 }
 0x392   :  { %v1249_v60 = vmul.f32 %v2043_v59, %v3131_v26  ;;  %v1565_v4 = vsel %vm1562_vm8, %v1564_v40, %v1560_v1  ;;  %v1578_v57 = vand.u32 2147483648, %v3147_v21  ;;  %v907_v5 = vadd.f32 %v2945_v41, %v875_v0 }
 0x393   :  { %2050 = vrcp.f32 %v3160_v50  ;;  %v2045_v61 = vpop.eup %2044  ;;  %1715 = vst.msk [vmem:[#allocation2 + $0x68] sm:$0xff] %vm308_vm0, %v1565_v4  ;;  %v1061_v7 = vadd.f32 %v1060_v53, %v995_v52  ;;  %vm3172_vm10 = vcmp.eq.f32.partialorder %v1257_v62, 8.507059e+37  ;;  %v1260_v11 = vor.u32 1.1754944e-38, %v1259_v63 }
 0x394   :  { %v812_v3 = vpop.f32.mrf.mxu2  ;;  %v1250_v2 = vsub.f32 1.0, %v1249_v60  ;;  %2052 = vpow2.f32 %v1956_v58  ;;  %v1568_v12 = vmul.f32 %v2045_v61, %v3147_v21  ;;  %vm1572_vm11 = vweird.f32 %v3147_v21  ;;  %v2047_v15 = vpop.eup %2046 }
 0x395   :  { %vm1254_vm12 = vweird.f32 %v2043_v59  ;;  %v1940_v16 = vmul.f32 -1.442695, %v907_v5  ;;  %v1088_v17 = vadd.f32 %v2945_v41, %v1061_v7  ;;  %vm3179_vm13 = vcmp.eq.f32.partialorder %v1576_v6, 8.507059e+37  ;;  %v3185_v23 = vpop.f32.mrf.mxu3 }
 0x396   :  { %v1251_v10 = vmul.f32 %v2043_v59, %v1250_v2  ;;  %v2049_v18 = vpop.eup %2048  ;;  %v1569_v19 = vsub.f32 1.0, %v1568_v12  ;;  %v1579_v8 = vor.u32 1.1754944e-38, %v1578_v57  ;;  %v3183_v22 = vadd.f32 1.0, %v2047_v15  ;;  %vm1255_vm14 = vmor %vm1253_vm9, %vm1254_vm12 }
 0x397   :  { %v998_v13 = vpop.f32.mrf.mxu0  ;;  %v1063_v14 = vpop.f32.mrf.mxu1  ;;  %v1272_v28 = vand.u32 2147483647, %v3160_v50  ;;  %v3188_v30 = vadd.f32 1.0, %v2049_v18  ;;  %2054 = vpow2.f32 %v1940_v16  ;;  %vm1573_vm15 = vweird.f32 %v2045_v61 }
 0x398   :  { %v1252_v25 = vadd.f32 %v2043_v59, %v1251_v10  ;;  %v1570_v31 = vmul.f32 %v2045_v61, %v1569_v19  ;;  %2056 = vrcp.f32 %v3183_v22  ;;  %v1274_v35 = vand.u32 2147483648, %v3160_v50  ;;  %vm1574_vm1 = vmor %vm1572_vm11, %vm1573_vm15 }
 0x399   :  { %v2051_v24 = vpop.eup %2050  ;;  %v1957_v36 = vmul.f32 -1.442695, %v1088_v17  ;;  %v878_v37 = vadd.f32 %v3149_v47, %v812_v3  ;;  %2058 = vrcp.f32 %v3188_v30  ;;  %vm1268_vm2 = vweird.f32 %v3160_v50 }
 0x39a   :  { %v1264_v32 = vmul.f32 %v2051_v24, %v3160_v50  ;;  %v2053_v33 = vpop.eup %2052  ;;  %v1256_v34 = vsel %vm1255_vm14, %v2043_v59, %v1252_v25  ;;  %v1571_v27 = vadd.f32 %v2045_v61, %v1570_v31  ;;  %vm3203_vm3 = vcmp.eq.f32.partialorder %v1272_v28, 8.507059e+37 }
 0x39b   :  { %v1261_v38 = vsel %vm3172_vm10, %v1260_v11, %v1256_v34  ;;  %v1591_v42 = vand.u32 2147483647, %v3183_v22  ;;  %v1064_v44 = vadd.f32 %v1063_v14, %v998_v13  ;;  %vm1269_vm4 = vweird.f32 %v2051_v24 }
 0x39c   :  { %v815_v29 = vpop.f32.mrf.mxu2  ;;  %v1265_v26 = vsub.f32 1.0, %v1264_v32  ;;  %1714 = vst.msk [vmem:[#allocation2 + $0x60] sm:$0xff] %vm308_vm0, %v1261_v38  ;;  %v1575_v47 = vsel %vm1574_vm1, %v2045_v61, %v1571_v27  ;;  %v3208_v49 = vadd.f32 1.0, %v2053_v33  ;;  %v1593_v53 = vand.u32 2147483648, %v3183_v22  ;;  %vm1270_vm5 = vmor %vm1268_vm2, %vm1269_vm4 }
 0x39d   :  { %v2055_v21 = vpop.eup %2054  ;;  %v1580_v52 = vsel %vm3179_vm13, %v1579_v8, %v1575_v47  ;;  %2060 = vpow2.f32 %v1957_v36  ;;  %v908_v54 = vadd.f32 %v2945_v41, %v878_v37  ;;  %v1275_v45 = vor.u32 1.1754944e-38, %v1274_v35  ;;  %v3234_v3 = vpop.f32.mrf.mxu3 }
 0x39e   :  { %v1266_v48 = vmul.f32 %v2051_v24, %v1265_v26  ;;  %v2057_v55 = vpop.eup %2056  ;;  %1717 = vst.msk [vmem:[#allocation2 + $0x78] sm:$0xff] %vm308_vm0, %v1580_v52  ;;  %v1287_v40 = vand.u32 2147483647, %v3188_v30  ;;  %2062 = vrcp.f32 %v3208_v49  ;;  %vm1587_vm6 = vweird.f32 %v3183_v22 }
 0x39f   :  { %v3210_v51 = vpop.f32.mrf.mxu0  ;;  %v3212_v46 = vpop.f32.mrf.mxu1  ;;  %v1583_v56 = vmul.f32 %v2057_v55, %v3183_v22  ;;  %vm3226_vm7 = vcmp.eq.f32.partialorder %v1591_v42, 8.507059e+37  ;;  %v1289_v59 = vand.u32 2147483648, %v3188_v30  ;;  %v3231_v0 = vadd.f32 1.0, %v2055_v21 }
 0x3a0   :  { %v1267_v43 = vadd.f32 %v2051_v24, %v1266_v48  ;;  %v2059_v62 = vpop.eup %2058  ;;  %v1941_v1 = vmul.f32 -1.442695, %v908_v54  ;;  %v1089_v60 = vadd.f32 %v2945_v41, %v1064_v44  ;;  %v1594_v6 = vor.u32 1.1754944e-38, %v1593_v53 }
 0x3a1   :  { %v1584_v4 = vsub.f32 1.0, %v1583_v56  ;;  %v1279_v57 = vmul.f32 %v2059_v62, %v3188_v30  ;;  %vm1283_vm8 = vweird.f32 %v3188_v30  ;;  %vm3243_vm9 = vcmp.eq.f32.partialorder %v1287_v40, 8.507059e+37 }
 0x3a2   :  { %v1271_v63 = vsel %vm1270_vm5, %v2051_v24, %v1267_v43  ;;  %v1606_v5 = vand.u32 2147483647, %v3208_v49  ;;  %2064 = vrcp.f32 %v3231_v0  ;;  %vm1588_vm10 = vweird.f32 %v2057_v55 }
 0x3a3   :  { %v1276_v50 = vsel %vm3203_vm3, %v1275_v45, %v1271_v63  ;;  %v2061_v7 = vpop.eup %2060  ;;  %v1585_v9 = vmul.f32 %v2057_v55, %v1584_v4  ;;  %v1280_v11 = vsub.f32 1.0, %v1279_v57  ;;  %v1290_v12 = vor.u32 1.1754944e-38, %v1289_v59  ;;  %vm1589_vm12 = vmor %vm1587_vm6, %vm1588_vm10 }
 0x3a4   :  { %v3239_v61 = vpop.f32.mrf.mxu2  ;;  %1716 = vst.msk [vmem:[#allocation2 + $0x70] sm:$0xff] %vm308_vm0, %v1276_v50  ;;  %v2063_v13 = vpop.eup %2062  ;;  %v3249_v14 = vadd.f32 1.0, %v2061_v7  ;;  %2066 = vpow2.f32 %v1941_v1  ;;  %v1958_v15 = vmul.f32 -1.442695, %v1089_v60  ;;  %v881_v10 = vadd.f32 %v3185_v23, %v815_v29  ;;  %v3304_v60 = vld [vmem:[%s3448_s12] ss:$0 sm:$0xff] }
 0x3a5   :  { %v1586_v18 = vadd.f32 %v2057_v55, %v1585_v9  ;;  %v1281_v19 = vmul.f32 %v2059_v62, %v1280_v11  ;;  %vm1284_vm11 = vweird.f32 %v2059_v62  ;;  %v1598_v20 = vmul.f32 %v2063_v13, %v3208_v49  ;;  %v886_v39 = vpop.f32.mrf.mxu3  ;;  %s2140_s12 = smov [#allocation2]  }
 0x3a6   :  { %vm1602_vm13 = vweird.f32 %v3208_v49  ;;  %vm3256_vm14 = vcmp.eq.f32.partialorder %v1606_v5, 8.507059e+37  ;;  %v1608_v24 = vand.u32 2147483648, %v3208_v49  ;;  %2068 = vrcp.f32 %v3249_v14  ;;  %vm1285_vm15 = vmor %vm1283_vm8, %vm1284_vm11  ;;  %s1738_s18 = sshll.u32 %s2140_s12, 4  ;;  %s1739_s18 = int_to_ptr.vmem [resolvable:$true] %s1738_s18 }
 0x3a7   :  { %v1004_v16 = vpop.f32.mrf.mxu0  ;;  %v1069_v17 = vpop.f32.mrf.mxu1  ;;  %v1590_v23 = vsel %vm1589_vm12, %v2057_v55, %v1586_v18  ;;  %v1282_v25 = vadd.f32 %v2059_v62, %v1281_v19  ;;  %v1599_v28 = vsub.f32 1.0, %v1598_v20  ;;  %v1302_v31 = vand.u32 2147483647, %v3231_v0 }
 0x3a8   :  { %v2065_v32 = vpop.eup %2064  ;;  %v1595_v22 = vsel %vm3226_vm7, %v1594_v6, %v1590_v23  ;;  %v1304_v33 = vand.u32 2147483648, %v3231_v0  ;;  %2070 = vpow2.f32 %v1958_v15  ;;  %v909_v34 = vadd.f32 %v2945_v41, %v881_v10 }
 0x3a9   :  { %1719 = vst.msk [vmem:[#allocation2 + $0x88] sm:$0xff] %vm308_vm0, %v1595_v22  ;;  %v1286_v35 = vsel %vm1285_vm15, %v2059_v62, %v1282_v25  ;;  %v1600_v36 = vmul.f32 %v2063_v13, %v1599_v28  ;;  %vm1603_vm1 = vweird.f32 %v2063_v13  ;;  %v1294_v37 = vmul.f32 %v2065_v32, %v3231_v0 }
 0x3aa   :  { %v2067_v38 = vpop.eup %2066  ;;  %v1291_v27 = vsel %vm3243_vm9, %v1290_v12, %v1286_v35  ;;  %v1609_v26 = vor.u32 1.1754944e-38, %v1608_v24  ;;  %vm1298_vm2 = vweird.f32 %v3231_v0  ;;  %v1942_v30 = vmul.f32 -1.442695, %v909_v34  ;;  %vm1604_vm4 = vmor %vm1602_vm13, %vm1603_vm1 }
 0x3ab   :  { %1718 = vst.msk [vmem:[#allocation2 + $0x80] sm:$0xff] %vm308_vm0, %v1291_v27  ;;  %v1601_v41 = vadd.f32 %v2063_v13, %v1600_v36  ;;  %v1295_v42 = vsub.f32 1.0, %v1294_v37  ;;  %vm3275_vm3 = vcmp.eq.f32.partialorder %v1302_v31, 8.507059e+37  ;;  %v3279_v47 = vadd.f32 1.0, %v2067_v38 }
 0x3ac   :  { %v821_v29 = vpop.f32.mrf.mxu2  ;;  %v2069_v48 = vpop.eup %2068  ;;  %vm1299_vm5 = vweird.f32 %v2065_v32  ;;  %v1305_v21 = vor.u32 1.1754944e-38, %v1304_v33  ;;  %2072 = vpow2.f32 %v1942_v30  ;;  %v1067_v52 = vadd.f32 %v3212_v46, %v3210_v51 }
 0x3ad   :  { %v1605_v53 = vsel %vm1604_vm4, %v2063_v13, %v1601_v41  ;;  %v1296_v54 = vmul.f32 %v2065_v32, %v1295_v42  ;;  %v1613_v55 = vmul.f32 %v2069_v48, %v3249_v14  ;;  %v884_v43 = vadd.f32 %v3234_v3, %v3239_v61  ;;  %vm1300_vm6 = vmor %vm1298_vm2, %vm1299_vm5 }
 0x3ae   :  { %v2071_v56 = vpop.eup %2070  ;;  %v1610_v49 = vsel %vm3256_vm14, %v1609_v26, %v1605_v53  ;;  %v1621_v58 = vand.u32 2147483647, %v3249_v14  ;;  %2074 = vrcp.f32 %v3279_v47  ;;  %v1070_v59 = vadd.f32 %v1069_v17, %v1004_v16  ;;  %v889_v16 = vpop.f32.mrf.mxu3 }
 0x3af   :  { %v1007_v45 = vpop.f32.mrf.mxu0  ;;  %v1072_v40 = vpop.f32.mrf.mxu1  ;;  %1721 = vst.msk [vmem:[#allocation2 + $0x98] sm:$0xff] %vm308_vm0, %v1610_v49  ;;  %v1297_v51 = vadd.f32 %v2065_v32, %v1296_v54  ;;  %v1614_v46 = vsub.f32 1.0, %v1613_v55  ;;  %v1623_v62 = vand.u32 2147483648, %v3249_v14  ;;  %v3295_v63 = vadd.f32 1.0, %v2071_v56 }
 0x3b0   :  { %vm1618_vm7 = vweird.f32 %v2069_v48  ;;  %v1317_v1 = vand.u32 2147483647, %v3279_v47  ;;  %v1090_v3 = vadd.f32 %v3304_v60, %v1067_v52  ;;  %v887_v50 = vadd.f32 %v886_v39, %v821_v29 }
 0x3b1   :  { %v1301_v4 = vsel %vm1300_vm6, %v2065_v32, %v1297_v51  ;;  %v1615_v6 = vmul.f32 %v2069_v48, %v1614_v46  ;;  %2076 = vrcp.f32 %v3295_v63  ;;  %v910_v57 = vadd.f32 %v3304_v60, %v884_v43 }
 0x3b2   :  { %v2073_v61 = vpop.eup %2072  ;;  %v1306_v0 = vsel %vm3275_vm3, %v1305_v21, %v1301_v4  ;;  %v1319_v2 = vand.u32 2147483648, %v3279_v47  ;;  %v1091_v5 = vadd.f32 %v3304_v60, %v1070_v59  ;;  %vm1617_vm8 = vweird.f32 %v3249_v14 }
 0x3b3   :  { %1720 = vst.msk [vmem:[#allocation2 + $0x90] sm:$0xff] %vm308_vm0, %v1306_v0  ;;  %v1616_v9 = vadd.f32 %v2069_v48, %v1615_v6  ;;  %v3315_v11 = vadd.f32 1.0, %v2073_v61  ;;  %v1959_v12 = vmul.f32 -1.442695, %v1090_v3  ;;  %vm1619_vm9 = vmor %vm1617_vm8, %vm1618_vm7  ;;  %vm1622_vm10 = vcmp.eq.f32.partialorder %v1621_v58, 8.507059e+37 }
 0x3b4   :  { %v824_v7 = vpop.f32.mrf.mxu2  ;;  %v2075_v13 = vpop.eup %2074  ;;  %v1624_v15 = vor.u32 1.1754944e-38, %v1623_v62  ;;  %vm1313_vm11 = vweird.f32 %v3279_v47  ;;  %v911_v10 = vadd.f32 %v3304_v60, %v887_v50  ;;  %vm3321_vm12 = vcmp.eq.f32.partialorder %v1317_v1, 8.507059e+37 }
 0x3b5   :  { %v1620_v17 = vsel %vm1619_vm9, %v2069_v48, %v1616_v9  ;;  %v1309_v18 = vmul.f32 %v2075_v13, %v3279_v47  ;;  %2078 = vrcp.f32 %v3315_v11  ;;  %v1943_v14 = vmul.f32 -1.442695, %v910_v57 }
 0x3b6   :  { %v1625_v20 = vsel %vm1622_vm10, %v1624_v15, %v1620_v17  ;;  %v1320_v8 = vor.u32 1.1754944e-38, %v1319_v2  ;;  %v1636_v24 = vand.u32 2147483647, %v3295_v63  ;;  %v1960_v23 = vmul.f32 -1.442695, %v1091_v5  ;;  %v892_v58 = vpop.f32.mrf.mxu3 }
 0x3b7   :  { %v2077_v25 = vpop.eup %2076  ;;  %1723 = vst.msk [vmem:[#allocation2 + $0xa8] sm:$0xff] %vm308_vm0, %v1625_v20  ;;  %v1310_v28 = vsub.f32 1.0, %v1309_v18  ;;  %2080 = vpow2.f32 %v1959_v12  ;;  %v1944_v31 = vmul.f32 -1.442695, %v911_v10  ;;  %v1073_v32 = vadd.f32 %v1072_v40, %v1007_v45  ;;  %v1010_v22 = vpop.f32.mrf.mxu0 }
 0x3b8   :  { %v1075_v33 = vpop.f32.mrf.mxu1  ;;  %vm1314_vm13 = vweird.f32 %v2075_v13  ;;  %v1628_v34 = vmul.f32 %v2077_v25, %v3295_v63  ;;  %vm1632_vm14 = vweird.f32 %v3295_v63  ;;  %v1638_v35 = vand.u32 2147483648, %v3295_v63 }
 0x3b9   :  { %v1311_v36 = vmul.f32 %v2075_v13, %v1310_v28  ;;  %2082 = vpow2.f32 %v1943_v14  ;;  %v1092_v37 = vadd.f32 %v3304_v60, %v1073_v32  ;;  %v890_v29 = vadd.f32 %v889_v16, %v824_v7  ;;  %vm1315_vm1 = vmor %vm1313_vm11, %vm1314_vm13 }
 0x3ba   :  { %v1629_v38 = vsub.f32 1.0, %v1628_v34  ;;  %vm3332_vm15 = vcmp.eq.f32.partialorder %v1636_v24, 8.507059e+37  ;;  %2084 = vpow2.f32 %v1960_v23  ;;  %v1076_v26 = vadd.f32 %v1075_v33, %v1010_v22 }
 0x3bb   :  { %v2079_v30 = vpop.eup %2078  ;;  %v1312_v39 = vadd.f32 %v2075_v13, %v1311_v36  ;;  %2086 = vpow2.f32 %v1944_v31  ;;  %v1961_v41 = vmul.f32 -1.442695, %v1092_v37  ;;  %v912_v42 = vadd.f32 %v3304_v60, %v890_v29 }
 0x3bc   :  { %v1630_v44 = vmul.f32 %v2077_v25, %v1629_v38  ;;  %vm1633_vm2 = vweird.f32 %v2077_v25  ;;  %v1324_v48 = vmul.f32 %v2079_v30, %v3315_v11  ;;  %v1093_v21 = vadd.f32 %v3304_v60, %v1076_v26  ;;  %v827_v52 = vpop.f32.mrf.mxu2 }
 0x3bd   :  { %v2081_v53 = vpop.eup %2080  ;;  %v1316_v54 = vsel %vm1315_vm1, %v2075_v13, %v1312_v39  ;;  %v1639_v55 = vor.u32 1.1754944e-38, %v1638_v35  ;;  %v1332_v43 = vand.u32 2147483647, %v3315_v11  ;;  %v1945_v45 = vmul.f32 -1.442695, %v912_v42  ;;  %vm1634_vm3 = vmor %vm1632_vm14, %vm1633_vm2 }
 0x3be   :  { %v1321_v40 = vsel %vm3321_vm12, %v1320_v8, %v1316_v54  ;;  %v1631_v56 = vadd.f32 %v2077_v25, %v1630_v44  ;;  %v1325_v49 = vsub.f32 1.0, %v1324_v48  ;;  %v3345_v47 = vadd.f32 1.0, %v2081_v53 }
 0x3bf   :  { %v2083_v59 = vpop.eup %2082  ;;  %1722 = vst.msk [vmem:[#allocation2 + $0xa0] sm:$0xff] %vm308_vm0, %v1321_v40  ;;  %v1334_v51 = vand.u32 2147483648, %v3315_v11  ;;  %2088 = vpow2.f32 %v1961_v41  ;;  %v1962_v46 = vmul.f32 -1.442695, %v1093_v21  ;;  %v893_v62 = vadd.f32 %v892_v58, %v827_v52 }
 0x3c0   :  { %v2085_v1 = vpop.eup %2084  ;;  %v1635_v3 = vsel %vm1634_vm3, %v2077_v25, %v1631_v56  ;;  %v1326_v50 = vmul.f32 %v2079_v30, %v1325_v49  ;;  %vm1329_vm4 = vweird.f32 %v2079_v30  ;;  %2090 = vrcp.f32 %v3345_v47 }
 0x3c1   :  { %v2087_v4 = vpop.eup %2086  ;;  %v1640_v6 = vsel %vm3332_vm15, %v1639_v55, %v1635_v3  ;;  %vm1328_vm5 = vweird.f32 %v3315_v11  ;;  %v3356_v57 = vadd.f32 1.0, %v2083_v59  ;;  %2092 = vpow2.f32 %v1945_v45 }
 0x3c2   :  { %1725 = vst.msk [vmem:[#allocation2 + $0xb8] sm:$0xff] %vm308_vm0, %v1640_v6  ;;  %v1327_v63 = vadd.f32 %v2079_v30, %v1326_v50  ;;  %v3359_v61 = vadd.f32 1.0, %v2085_v1  ;;  %v3361_v0 = vadd.f32 1.0, %v2087_v4  ;;  %2094 = vpow2.f32 %v1962_v46  ;;  %vm1330_vm6 = vmor %vm1328_vm5, %vm1329_vm4 }
 0x3c3   :  { %v1335_v2 = vor.u32 1.1754944e-38, %v1334_v51  ;;  %2096 = vrcp.f32 %v3356_v57  ;;  %v913_v5 = vadd.f32 %v3304_v60, %v893_v62  ;;  %vm1333_vm7 = vcmp.eq.f32.partialorder %v1332_v43, 8.507059e+37 }
 0x3c4   :  { %v1331_v7 = vsel %vm1330_vm6, %v2079_v30, %v1327_v63  ;;  %v1651_v9 = vand.u32 2147483647, %v3345_v47  ;;  %2098 = vrcp.f32 %v3359_v61  ;;  %v1653_v13 = vand.u32 2147483648, %v3345_v47 }
 0x3c5   :  { %v2089_v11 = vpop.eup %2088  ;;  %v1336_v12 = vsel %vm1333_vm7, %v1335_v2, %v1331_v7  ;;  %2100 = vrcp.f32 %v3361_v0  ;;  %v1946_v17 = vmul.f32 -1.442695, %v913_v5  ;;  %vm1647_vm8 = vweird.f32 %v3345_v47 }
 0x3c6   :  { %v2091_v15 = vpop.eup %2090  ;;  %1724 = vst.msk [vmem:[#allocation2 + $0xb0] sm:$0xff] %vm308_vm0, %v1336_v12  ;;  %vm3372_vm9 = vcmp.eq.f32.partialorder %v1651_v9, 8.507059e+37  ;;  %v1347_v19 = vand.u32 2147483647, %v3356_v57  ;;  %v3377_v14 = vadd.f32 1.0, %v2089_v11  ;;  %v1654_v24 = vor.u32 1.1754944e-38, %v1653_v13 }
 0x3c7   :  { %v2093_v10 = vpop.eup %2092  ;;  %v1643_v16 = vmul.f32 %v2091_v15, %v3345_v47  ;;  %vm1343_vm10 = vweird.f32 %v3356_v57  ;;  %v1349_v23 = vand.u32 2147483648, %v3356_v57  ;;  %vm1662_vm11 = vweird.f32 %v3359_v61 }
 0x3c8   :  { %v2095_v60 = vpop.eup %2094  ;;  %v1666_v31 = vand.u32 2147483647, %v3359_v61  ;;  %v3384_v32 = vadd.f32 1.0, %v2093_v10  ;;  %vm1648_vm12 = vweird.f32 %v2091_v15  ;;  %2102 = vrcp.f32 %v3377_v14 }
 0x3c9   :  { %v2097_v20 = vpop.eup %2096  ;;  %v1644_v8 = vsub.f32 1.0, %v1643_v16  ;;  %vm3388_vm13 = vcmp.eq.f32.partialorder %v1347_v19, 8.507059e+37  ;;  %v1668_v37 = vand.u32 2147483648, %v3359_v61  ;;  %2104 = vpow2.f32 %v1946_v17  ;;  %vm1649_vm14 = vmor %vm1647_vm8, %vm1648_vm12 }
 0x3ca   :  { %v2099_v25 = vpop.eup %2098  ;;  %v1339_v28 = vmul.f32 %v2097_v20, %v3356_v57  ;;  %v3394_v26 = vadd.f32 1.0, %v2095_v60  ;;  %vm1344_vm15 = vweird.f32 %v2097_v20  ;;  %v1350_v39 = vor.u32 1.1754944e-38, %v1349_v23 }
 0x3cb   :  { %v1645_v22 = vmul.f32 %v2091_v15, %v1644_v8  ;;  %v1658_v33 = vmul.f32 %v2099_v25, %v3359_v61  ;;  %v2101_v34 = vpop.eup %2100  ;;  %2106 = vrcp.f32 %v3384_v32  ;;  %vm1663_vm1 = vweird.f32 %v2099_v25  ;;  %vm1345_vm2 = vmor %vm1343_vm10, %vm1344_vm15 }
 0x3cc   :  { %v1340_v35 = vsub.f32 1.0, %v1339_v28  ;;  %v1354_v27 = vmul.f32 %v2101_v34, %v3361_v0  ;;  %v1362_v52 = vand.u32 2147483647, %v3361_v0  ;;  %v1364_v53 = vand.u32 2147483648, %v3361_v0  ;;  %vm1664_vm4 = vmor %vm1662_vm11, %vm1663_vm1 }
 0x3cd   :  { %v1646_v29 = vadd.f32 %v2091_v15, %v1645_v22  ;;  %v1659_v38 = vsub.f32 1.0, %v1658_v33  ;;  %vm1359_vm3 = vweird.f32 %v2101_v34  ;;  %2108 = vrcp.f32 %v3394_v26 }
 0x3ce   :  { %v1341_v30 = vmul.f32 %v2097_v20, %v1340_v35  ;;  %v1355_v44 = vsub.f32 1.0, %v1354_v27  ;;  %v2103_v54 = vpop.eup %2102  ;;  %v1669_v56 = vor.u32 1.1754944e-38, %v1668_v37  ;;  %vm1358_vm5 = vweird.f32 %v3361_v0 }
 0x3cf   :  { %v1650_v41 = vsel %vm1649_vm14, %v2091_v15, %v1646_v29  ;;  %v1660_v42 = vmul.f32 %v2099_v25, %v1659_v38  ;;  %v2105_v45 = vpop.eup %2104  ;;  %v1673_v49 = vmul.f32 %v2103_v54, %v3377_v14  ;;  %vm1667_vm6 = vcmp.eq.f32.partialorder %v1666_v31, 8.507059e+37  ;;  %vm1360_vm7 = vmor %vm1358_vm5, %vm1359_vm3 }
 0x3d0   :  { %v1655_v48 = vsel %vm3372_vm9, %v1654_v24, %v1650_v41  ;;  %v1342_v21 = vadd.f32 %v2097_v20, %v1341_v30  ;;  %v1356_v43 = vmul.f32 %v2101_v34, %v1355_v44  ;;  %vm1363_vm8 = vcmp.eq.f32.partialorder %v1362_v52, 8.507059e+37 }
 0x3d1   :  { %1727 = vst.msk [vmem:[#allocation2 + $0xc8] sm:$0xff] %vm308_vm0, %v1655_v48  ;;  %v1661_v55 = vadd.f32 %v2099_v25, %v1660_v42  ;;  %v2107_v51 = vpop.eup %2106  ;;  %v1365_v62 = vor.u32 1.1754944e-38, %v1364_v53  ;;  %v1674_v1 = vsub.f32 1.0, %v1673_v49  ;;  %v1683_v50 = vand.u32 2147483648, %v3377_v14 }
 0x3d2   :  { %v1346_v40 = vsel %vm1345_vm2, %v2097_v20, %v1342_v21  ;;  %v1357_v59 = vadd.f32 %v2101_v34, %v1356_v43  ;;  %v1369_v4 = vmul.f32 %v2107_v51, %v3384_v32  ;;  %v1157_v6 = vadd.f32 1.0, %v2105_v45 }
 0x3d3   :  { %v1351_v47 = vsel %vm3388_vm13, %v1350_v39, %v1346_v40  ;;  %v1665_v58 = vsel %vm1664_vm4, %v2099_v25, %v1661_v55  ;;  %v1675_v63 = vmul.f32 %v2103_v54, %v1674_v1  ;;  %vm1678_vm9 = vweird.f32 %v2103_v54  ;;  %v2109_v0 = vpop.eup %2108 }
 0x3d4   :  { %1726 = vst.msk [vmem:[#allocation2 + $0xc0] sm:$0xff] %vm308_vm0, %v1351_v47  ;;  %v1670_v46 = vsel %vm1667_vm6, %v1669_v56, %v1665_v58  ;;  %v1361_v3 = vsel %vm1360_vm7, %v2101_v34, %v1357_v59  ;;  %v1681_v61 = vand.u32 2147483647, %v3377_v14  ;;  %v1370_v2 = vsub.f32 1.0, %v1369_v4 }
 0x3d5   :  { %1729 = vst.msk [vmem:[#allocation2 + $0xd8] sm:$0xff] %vm308_vm0, %v1670_v46  ;;  %v1366_v57 = vsel %vm1363_vm8, %v1365_v62, %v1361_v3  ;;  %2110 = vrcp.f32 %v1157_v6  ;;  %v1676_v5 = vadd.f32 %v2103_v54, %v1675_v63  ;;  %vm1677_vm10 = vweird.f32 %v3377_v14 }
 0x3d6   :  { %1728 = vst.msk [vmem:[#allocation2 + $0xd0] sm:$0xff] %vm308_vm0, %v1366_v57  ;;  %v1379_v7 = vand.u32 2147483648, %v3384_v32  ;;  %v1688_v9 = vmul.f32 %v2109_v0, %v3394_v26  ;;  %vm1679_vm11 = vmor %vm1677_vm10, %vm1678_vm9  ;;  %v1684_v11 = vor.u32 1.1754944e-38, %v1683_v50  ;;  %v1371_v12 = vmul.f32 %v2107_v51, %v1370_v2 }
 0x3d7   :  { %vm1374_vm12 = vweird.f32 %v2107_v51  ;;  %v1377_v13 = vand.u32 2147483647, %v3384_v32  ;;  %v1680_v15 = vsel %vm1679_vm11, %v2103_v54, %v1676_v5  ;;  %vm1682_vm13 = vcmp.eq.f32.partialorder %v1681_v61, 8.507059e+37 }
 0x3d8   :  { %v1689_v10 = vsub.f32 1.0, %v1688_v9  ;;  %v1685_v16 = vsel %vm1682_vm13, %v1684_v11, %v1680_v15  ;;  %v1372_v17 = vadd.f32 %v2107_v51, %v1371_v12  ;;  %vm1373_vm14 = vweird.f32 %v3384_v32 }
 0x3d9   :  { %v1698_v60 = vand.u32 2147483648, %v3394_v26  ;;  %1731 = vst.msk [vmem:[#allocation2 + $0xe8] sm:$0xff] %vm308_vm0, %v1685_v16  ;;  %vm1375_vm15 = vmor %vm1373_vm14, %vm1374_vm12  ;;  %v1380_v18 = vor.u32 1.1754944e-38, %v1379_v7  ;;  %vm1693_vm1 = vweird.f32 %v2109_v0  ;;  %v1696_v14 = vand.u32 2147483647, %v3394_v26 }
 0x3da   :  { %v1690_v19 = vmul.f32 %v2109_v0, %v1689_v10  ;;  %v1376_v8 = vsel %vm1375_vm15, %v2107_v51, %v1372_v17  ;;  %vm1378_vm2 = vcmp.eq.f32.partialorder %v1377_v13, 8.507059e+37  ;;  %vm1692_vm3 = vweird.f32 %v3394_v26 }
 0x3db   :  { %v2111_v20 = vpop.eup %2110  ;;  %v1381_v24 = vsel %vm1378_vm2, %v1380_v18, %v1376_v8  ;;  %vm1694_vm4 = vmor %vm1692_vm3, %vm1693_vm1  ;;  %v1699_v28 = vor.u32 1.1754944e-38, %v1698_v60  ;;  %vm1697_vm5 = vcmp.eq.f32.partialorder %v1696_v14, 8.507059e+37  ;;  %v1394_v33 = vand.u32 2147483648, %v1157_v6 }
 0x3dc   :  { %v1691_v23 = vadd.f32 %v2109_v0, %v1690_v19  ;;  %v1384_v25 = vmul.f32 %v2111_v20, %v1157_v6  ;;  %1730 = vst.msk [vmem:[#allocation2 + $0xe0] sm:$0xff] %vm308_vm0, %v1381_v24  ;;  %vm1389_vm6 = vweird.f32 %v2111_v20  ;;  %v1392_v35 = vand.u32 2147483647, %v1157_v6 }
 0x3dd   :  { %vm1388_vm7 = vweird.f32 %v1157_v6  ;;  %v1395_v37 = vor.u32 1.1754944e-38, %v1394_v33 }
 0x3de   :  { %v1695_v31 = vsel %vm1694_vm4, %v2109_v0, %v1691_v23  ;;  %v1385_v32 = vsub.f32 1.0, %v1384_v25  ;;  %vm1390_vm8 = vmor %vm1388_vm7, %vm1389_vm6  ;;  %vm1393_vm9 = vcmp.eq.f32.partialorder %v1392_v35, 8.507059e+37 }
 0x3df   :  { %v1700_v22 = vsel %vm1697_vm5, %v1699_v28, %v1695_v31 }
 0x3e0   :  { %1733 = vst.msk [vmem:[#allocation2 + $0xf8] sm:$0xff] %vm308_vm0, %v1700_v22  ;;  %v1386_v34 = vmul.f32 %v2111_v20, %v1385_v32 }
 0x3e2   :  { %v1387_v36 = vadd.f32 %v2111_v20, %v1386_v34 }
 0x3e4   :  { %v1391_v29 = vsel %vm1390_vm8, %v2111_v20, %v1387_v36 }
 0x3e5   :  { %v1396_v38 = vsel %vm1393_vm9, %v1395_v37, %v1391_v29 }
 0x3e6   :  { %1732 = vst.msk [vmem:[#allocation2 + $0xf0] sm:$0xff] %vm308_vm0, %v1396_v38 }
 0x3e7   :  { %1746 = dma.vmem_to_hbm [thread:$0]  %s1739_s18, 4096, %s1741_s8, [#allocation3], %s2141_s9, %s2141_s9, %s2142_s6  }
 0x3e8   :  { %2137 = dma.done.wait [#allocation3], 4096  }
 0x3e9   :  { %2138 = vsyncadd [#allocation3], 4294963200 }
 0x3ea   :  { %1751 = vsyncpa [#allocation3], 1 }

</bundles_post_ra>
